<compile_context>
chip_gen: v7x
topology: tpu7x:2x2x1
jax: 0.10.0
libtpu: 0.0.40
codegen_flags: <defaults>
</compile_context>

<pallas_src>
import jax
import jax.numpy as jnp
from jax import lax
from jax.experimental import pallas as pl
from jax.experimental.pallas import tpu as pltpu

# Small, module-consistent sizes (n_layers=2 from the module; hidden/embedding/vocab
# scaled down; encoder/decoder vocab sizes are synthetic).
B, S, T, L = 8, 8, 8, 2          # batch, src_len, trg_len, n_layers
E, H = 16, 32                    # embedding_dim, hidden_dim
V, IV = 64, 32                   # decoder (semantic) vocab, encoder (agnostic) vocab
VPAD, IVPAD = 128, 128           # lane-dense padded vocab sizes for the kernels


def _lstm_gates(gates, c_prev):
    """PyTorch LSTM gate order (i, f, g, o); all VPU math kept in f32."""
    i_g = jax.nn.sigmoid(gates[:, 0 * H:1 * H])
    f_g = jax.nn.sigmoid(gates[:, 1 * H:2 * H])
    g_g = jnp.tanh(gates[:, 2 * H:3 * H])
    o_g = jax.nn.sigmoid(gates[:, 3 * H:4 * H])
    c_new = f_g * c_prev + i_g * g_g
    return o_g * jnp.tanh(c_new), c_new


# -----------------------------------------------------------------------------
# Encoder kernel: one invocation, fori_loop over the source length.
# -----------------------------------------------------------------------------
def encoder_kernel(src_oh_ref,                 # [S, B, IVPAD] f32 one-hot source
                   emb_ref,                    # [IVPAD, E] bf16
                   w0_ref, b0_ref,             # [E+H, 4H] bf16, [1, 4H] f32
                   w1_ref, b1_ref,             # [2H, 4H] bf16, [1, 4H] f32
                   enc_out_ref,                # out [S, B, H] f32
                   h_out_ref, c_out_ref):      # out [L, B, H] f32 each
    n_steps = src_oh_ref.shape[0]
    emb_t = emb_ref[...]
    w0 = w0_ref[...]
    b0 = b0_ref[...]
    w1 = w1_ref[...]
    b1 = b1_ref[...]

    def step(t, carry):
        h0, c0, h1, c1 = carry
        emb = jnp.dot(src_oh_ref[t].astype(jnp.bfloat16), emb_t,
                      preferred_element_type=jnp.float32)                    # [B, E]
        x0 = jnp.concatenate([emb, h0], axis=-1).astype(jnp.bfloat16)        # [B, E+H]
        g0 = jnp.dot(x0, w0, preferred_element_type=jnp.float32) + b0
        h0n, c0n = _lstm_gates(g0, c0)
        # inter-layer dropout is identity in eval mode
        x1 = jnp.concatenate([h0n, h1], axis=-1).astype(jnp.bfloat16)        # [B, 2H]
        g1 = jnp.dot(x1, w1, preferred_element_type=jnp.float32) + b1
        h1n, c1n = _lstm_gates(g1, c1)
        enc_out_ref[t] = h1n
        return h0n, c0n, h1n, c1n

    z = jnp.zeros((src_oh_ref.shape[1], H), jnp.float32)
    h0, c0, h1, c1 = lax.fori_loop(0, n_steps, step, (z, z, z, z), unroll=True)
    h_out_ref[0] = h0
    h_out_ref[1] = h1
    c_out_ref[0] = c0
    c_out_ref[1] = c1


def encoder_forward_pallas(eparams, src):
    """Encoder.forward (eval mode).  src: [S, B] int32.  Returns (enc_out, hidden, cell)."""
    src_oh = jax.nn.one_hot(src, IVPAD, dtype=jnp.float32)                   # [S, B, IVPAD]
    emb_bf = jnp.zeros((IVPAD, E), jnp.bfloat16).at[:IV].set(
        eparams['embedding'].astype(jnp.bfloat16))
    w0 = jnp.concatenate([eparams['wih0'], eparams['whh0']], axis=0).astype(jnp.bfloat16)
    b0 = eparams['bih0'] + eparams['bhh0']
    w1 = jnp.concatenate([eparams['wih1'], eparams['whh1']], axis=0).astype(jnp.bfloat16)
    b1 = eparams['bih1'] + eparams['bhh1']
    return pl.pallas_call(
        encoder_kernel,
        out_shape=(jax.ShapeDtypeStruct((S, B, H), jnp.float32),
                   jax.ShapeDtypeStruct((L, B, H), jnp.float32),
                   jax.ShapeDtypeStruct((L, B, H), jnp.float32)),
    )(src_oh, emb_bf, w0, b0, w1, b1)


# -----------------------------------------------------------------------------
# Fused decoder kernel: single invocation, fori_loop over decode steps t = 1..T-1.
# -----------------------------------------------------------------------------
def decoder_kernel(tf_ref,                                   # SMEM [T-1] int32 (scalar prefetch)
                   trg_oh_ref,                               # [T-1, B, VPAD] f32 (teacher one-hots)
                   h0_ref, c0_ref,                           # [L, B, H] f32 initial LSTM state
                   enc_ref, encp_ref,                        # [B, S, H] f32 (enc outs, enc @ W2)
                   attn_w1_ref, attn_b_ref, v_ref,           # [H,H] bf16, [1,H] f32, [1,H] f32
                   emb_ref,                                  # [VPAD, E] bf16
                   w0_ref, b0_ref,                           # [E+2H, 4H] bf16, [1, 4H] f32
                   w1_ref, b1_ref,                           # [2H, 4H]   bf16, [1, 4H] f32
                   fcw_ref, fcb_ref,                         # [2H, VPAD] bf16, [1, VPAD] f32 (-1e30 pad)
                   logits_ref):                              # out [T-1, B, VPAD] f32
    n_steps = trg_oh_ref.shape[0]

    # Hoist every loop-invariant load / broadcast out of the decode loop.
    enc = enc_ref[...]
    encp = encp_ref[...]
    attn_w1 = attn_w1_ref[...]
    attn_b = attn_b_ref[...]
    v = v_ref[...]
    emb_t = emb_ref[...]
    w0 = w0_ref[...]
    b0 = b0_ref[...]
    w1 = w1_ref[...]
    b1 = b1_ref[...]
    fcw = fcw_ref[...]
    fcb = fcb_ref[...]
    lane = lax.broadcasted_iota(jnp.int32, (B, VPAD), 1)

    def step(t, carry):
        h0, c0, h1, c1, prev_oh = carry

        # ---- input token: teacher-forced trg[t] vs previous step's greedy argmax ----
        # sel is exactly 0.0 or 1.0, so the blend is an exact select.
        sel = jnp.logical_or(t == 0, tf_ref[t] != 0).astype(jnp.float32)
        input_oh = sel * trg_oh_ref[t] + (1.0 - sel) * prev_oh               # [B, VPAD]
        # Embedding gather as a one-hot MXU matmul.  Dropout = identity (eval mode).
        emb = jnp.dot(input_oh.astype(jnp.bfloat16), emb_t,
                      preferred_element_type=jnp.float32)                    # [B, E]

        # ---- attention: only the h-dependent half runs per step (enc @ W2 hoisted) ----
        hW = jnp.dot(h1.astype(jnp.bfloat16), attn_w1,
                     preferred_element_type=jnp.float32) + attn_b            # [B, H]
        energy = jnp.tanh(encp + hW[:, None, :])                             # [B, S, H]
        scores = jnp.sum(energy * v[None, :, :], axis=-1)                    # [B, S]
        es = jnp.exp(scores)                                                 # bounded; no max-sub
        attn = es / jnp.sum(es, axis=1, keepdims=True)
        weighted = jnp.sum(attn[:, :, None] * enc, axis=1)                   # [B, H]

        # ---- 2-layer LSTM step; fused cat(emb, weighted, h) @ [Wih; Whh] dots ----
        x0 = jnp.concatenate([emb, weighted, h0], axis=-1).astype(jnp.bfloat16)   # [B, E+2H]
        g0 = jnp.dot(x0, w0, preferred_element_type=jnp.float32) + b0
        h0n, c0n = _lstm_gates(g0, c0)

        x1 = jnp.concatenate([h0n, h1], axis=-1).astype(jnp.bfloat16)        # [B, 2H]
        g1 = jnp.dot(x1, w1, preferred_element_type=jnp.float32) + b1
        h1n, c1n = _lstm_gates(g1, c1)

        # ---- fc_out(cat(output, weighted)) as one dot; lane-dense 128-wide logits ----
        xf = jnp.concatenate([h1n, weighted], axis=-1).astype(jnp.bfloat16)  # [B, 2H]
        logits = jnp.dot(xf, fcw, preferred_element_type=jnp.float32) + fcb  # [B, VPAD]
        logits_ref[t] = logits

        # ---- greedy top-1 one-hot for the next step's non-teacher-forced input ----
        m = jnp.max(logits, axis=-1, keepdims=True)
        first = jnp.min(jnp.where(logits == m, lane, VPAD), axis=-1, keepdims=True)
        new_oh = (lane == first).astype(jnp.float32)
        return h0n, c0n, h1n, c1n, new_oh

    init = (h0_ref[0], c0_ref[0], h0_ref[1], c0_ref[1],
            jnp.zeros((B, VPAD), jnp.float32))
    lax.fori_loop(0, n_steps, step, init, unroll=True)


def decoder_decode(params, trg, hidden, cell, encoder_outputs, tf_flags):
    """trg: [T, B] int32; hidden/cell: [L, B, H]; encoder_outputs: [S, B, H] (PyTorch
    layout); tf_flags: [T-1] int (teacher-forcing decision per decode step; index 0 ignored)."""
    trg_len = trg.shape[0]

    enc_bsh = jnp.transpose(encoder_outputs, (1, 0, 2))                      # [B, S, H]
    W = params['attn_w']                                                     # [2H, H]
    attn_w1 = W[:H, :].astype(jnp.bfloat16)
    # Hoisted, loop-invariant encoder projection (computed once per sequence).
    enc_proj = jnp.einsum('bsh,hk->bsk', enc_bsh.astype(jnp.bfloat16),
                          W[H:, :].astype(jnp.bfloat16),
                          preferred_element_type=jnp.float32)                # [B, S, H]

    # Vocab-padded (lane-dense) embedding table and output head; padded logit biases are
    # -1e30 so the in-kernel greedy argmax never selects a padding token.
    emb_pad = jnp.zeros((VPAD, E), jnp.bfloat16).at[:V].set(
        params['embedding'].astype(jnp.bfloat16))
    fcw = jnp.zeros((2 * H, VPAD), jnp.bfloat16).at[:, :V].set(
        params['fc_w'].astype(jnp.bfloat16))
    fcb = jnp.full((1, VPAD), -1e30, jnp.float32).at[:, :V].set(params['fc_b'])

    # Fused (concatenated) LSTM weights, folded biases.
    w0 = jnp.concatenate([params['wih0'], params['whh0']], axis=0).astype(jnp.bfloat16)
    b0 = params['bih0'] + params['bhh0']
    w1 = jnp.concatenate([params['wih1'], params['whh1']], axis=0).astype(jnp.bfloat16)
    b1 = params['bih1'] + params['bhh1']

    trg_oh = jax.nn.one_hot(trg[:trg_len - 1], VPAD, dtype=jnp.float32)      # [T-1, B, VPAD]
    tf32 = tf_flags.astype(jnp.int32)

    c2 = lambda i, tf: (0, 0)
    c3 = lambda i, tf: (0, 0, 0)

    grid_spec = pltpu.PrefetchScalarGridSpec(
        num_scalar_prefetch=1,
        grid=(1,),                                  # whole decode loop in one invocation
        in_specs=[
            pl.BlockSpec((trg_len - 1, B, VPAD), c3),   # teacher one-hots (resident)
            pl.BlockSpec((L, B, H), c3),                # initial hidden
            pl.BlockSpec((L, B, H), c3),                # initial cell
            pl.BlockSpec((B, S, H), c3),                # encoder outputs
            pl.BlockSpec((B, S, H), c3),                # hoisted enc @ W2
            pl.BlockSpec((H, H), c2),                   # attn W1 (bf16)
            pl.BlockSpec((1, H), c2),                   # attn bias
            pl.BlockSpec((1, H), c2),                   # attn v
            pl.BlockSpec((VPAD, E), c2),                # embedding table (bf16, padded)
            pl.BlockSpec((E + 2 * H, 4 * H), c2),       # fused [wih0; whh0]
            pl.BlockSpec((1, 4 * H), c2),               # b0
            pl.BlockSpec((2 * H, 4 * H), c2),           # fused [wih1; whh1]
            pl.BlockSpec((1, 4 * H), c2),               # b1
            pl.BlockSpec((2 * H, VPAD), c2),            # fused fc weight (bf16, padded)
            pl.BlockSpec((1, VPAD), c2),                # fc bias (-1e30 padded)
        ],
        out_specs=pl.BlockSpec((trg_len - 1, B, VPAD), c3),
    )

    logits_pad = pl.pallas_call(
        decoder_kernel,
        out_shape=jax.ShapeDtypeStruct((trg_len - 1, B, VPAD), jnp.float32),
        grid_spec=grid_spec,
        compiler_params=pltpu.CompilerParams(dimension_semantics=("arbitrary",)),
    )(tf32, trg_oh, hidden, cell, enc_bsh, enc_proj,
      attn_w1, params['attn_b'], params['v_w'], emb_pad,
      w0, b0, w1, b1, fcw, fcb)

    # Seq2Seq.forward leaves outputs[0] as zeros; slice the vocab padding away.
    return jnp.concatenate(
        [jnp.zeros((1, B, V), jnp.float32), logits_pad[:, :, :V]], axis=0)   # [T, B, V]


def seq2seq_forward(enc_params, dec_params, src, trg, tf_flags):
    encoder_outputs, hidden, cell = encoder_forward_pallas(enc_params, src)
    return decoder_decode(dec_params, trg, hidden, cell, encoder_outputs, tf_flags)


# -----------------------------------------------------------------------------
# Pure-JAX reference mirroring the PyTorch modules (eval mode).  Matmul inputs are cast
# to bf16 (f32 accumulation) to match the kernel's MXU precision so the greedy-feedback
# path makes identical argmax decisions.
# -----------------------------------------------------------------------------
def bdot(a, b):
    return jnp.dot(a.astype(jnp.bfloat16), b.astype(jnp.bfloat16),
                   preferred_element_type=jnp.float32)


def lstm_cell_ref(x, h, c, wih, whh, bih, bhh):
    g = bdot(x, wih) + bih + bdot(h, whh) + bhh
    i, f, gg, o = jnp.split(g, 4, axis=-1)
    i = jax.nn.sigmoid(i)
    f = jax.nn.sigmoid(f)
    gg = jnp.tanh(gg)
    o = jax.nn.sigmoid(o)
    c_new = f * c + i * gg
    return o * jnp.tanh(c_new), c_new


def encoder_reference(p, src):
    emb_seq = p['embedding'][src]                                            # [S, B, E]

    def step(carry, x_t):
        h0, c0, h1, c1 = carry
        h0, c0 = lstm_cell_ref(x_t, h0, c0, p['wih0'], p['whh0'], p['bih0'], p['bhh0'])
        h1, c1 = lstm_cell_ref(h0, h1, c1, p['wih1'], p['whh1'], p['bih1'], p['bhh1'])
        return (h0, c0, h1, c1), h1

    zero = jnp.zeros((src.shape[1], H), jnp.float32)
    (h0, c0, h1, c1), outputs = lax.scan(step, (zero, zero, zero, zero), emb_seq)
    return outputs, jnp.stack([h0, h1]), jnp.stack([c0, c1])


def decoder_reference(params, trg, hidden, cell, encoder_outputs, tf_flags):
    trg_len, batch = trg.shape
    enc_bsh = jnp.transpose(encoder_outputs, (1, 0, 2))                      # [B, S, H]
    src_len = enc_bsh.shape[1]
    outs = [jnp.zeros((batch, V), jnp.float32)]
    h = [hidden[0], hidden[1]]
    c = [cell[0], cell[1]]
    inp = trg[0]
    for t in range(1, trg_len):
        emb = params['embedding'][inp]                                       # [B, E]
        rep = jnp.broadcast_to(h[1][:, None, :], (batch, src_len, H))
        energy = jnp.tanh(bdot(jnp.concatenate([rep, enc_bsh], axis=-1),
                               params['attn_w']) + params['attn_b'])
        scores = jnp.sum(energy * params['v_w'], axis=-1)                    # [B, S]
        attnw = jax.nn.softmax(scores, axis=1)
        weighted = jnp.sum(attnw[:, :, None] * enc_bsh, axis=1)              # [B, H]
        x = jnp.concatenate([emb, weighted], axis=1)
        h0n, c0n = lstm_cell_ref(x, h[0], c[0], params['wih0'], params['whh0'],
                                 params['bih0'], params['bhh0'])
        h1n, c1n = lstm_cell_ref(h0n, h[1], c[1], params['wih1'], params['whh1'],
                                 params['bih1'], params['bhh1'])
        h = [h0n, h1n]
        c = [c0n, c1n]
        logits = bdot(jnp.concatenate([h1n, weighted], axis=1),
                      params['fc_w']) + params['fc_b']
        outs.append(logits)
        if t < trg_len - 1:
            top1 = jnp.argmax(logits, axis=1).astype(trg.dtype)
            inp = jnp.where(tf_flags[t] != 0, trg[t], top1)
    return jnp.stack(outs)


def seq2seq_reference_full(enc_params, dec_params, src, trg, tf_flags):
    enc_out, hidden, cell = encoder_reference(enc_params, src)
    return decoder_reference(dec_params, trg, hidden, cell, enc_out, tf_flags)


# -----------------------------------------------------------------------------
if __name__ == "__main__":
    key = jax.random.PRNGKey(0)
    ks = jax.random.split(key, 32)

    def rnd(k, shape, scale=0.1):
        return (scale * jax.random.normal(k, shape)).astype(jnp.float32)

    enc_params = {
        'embedding': rnd(ks[0], (IV, E)),
        'wih0': rnd(ks[1], (E, 4 * H)), 'whh0': rnd(ks[2], (H, 4 * H)),
        'bih0': rnd(ks[3], (1, 4 * H)), 'bhh0': rnd(ks[4], (1, 4 * H)),
        'wih1': rnd(ks[5], (H, 4 * H)), 'whh1': rnd(ks[6], (H, 4 * H)),
        'bih1': rnd(ks[7], (1, 4 * H)), 'bhh1': rnd(ks[8], (1, 4 * H)),
    }
    dec_params = {
        'embedding': rnd(ks[9], (V, E)),
        'attn_w': rnd(ks[10], (2 * H, H)), 'attn_b': rnd(ks[11], (1, H)),
        'v_w': rnd(ks[12], (1, H)),
        'wih0': rnd(ks[13], (E + H, 4 * H)), 'whh0': rnd(ks[14], (H, 4 * H)),
        'bih0': rnd(ks[15], (1, 4 * H)), 'bhh0': rnd(ks[16], (1, 4 * H)),
        'wih1': rnd(ks[17], (H, 4 * H)), 'whh1': rnd(ks[18], (H, 4 * H)),
        'bih1': rnd(ks[19], (1, 4 * H)), 'bhh1': rnd(ks[20], (1, 4 * H)),
        'fc_w': rnd(ks[21], (2 * H, V)), 'fc_b': rnd(ks[22], (1, V)),
    }

    src = jax.random.randint(ks[23], (S, B), 0, IV, dtype=jnp.int32)
    trg = jax.random.randint(ks[24], (T, B), 0, V, dtype=jnp.int32)
    tf_ones = jnp.ones((T - 1,), jnp.int32)
    tf_mix = jax.random.bernoulli(ks[25], 0.5, (T - 1,)).astype(jnp.int32)

    enc_fn = jax.jit(encoder_forward_pallas)
    dec_fn = jax.jit(decoder_decode)
    full_fn = jax.jit(seq2seq_forward)

    # (1) Encoder kernel parity.
    enc_k, hid_k, cel_k = enc_fn(enc_params, src)
    jax.block_until_ready(enc_k)
    enc_r, hid_r, cel_r = encoder_reference(enc_params, src)
    err_enc = max(float(jnp.max(jnp.abs(enc_k - enc_r))),
                  float(jnp.max(jnp.abs(hid_k - hid_r))),
                  float(jnp.max(jnp.abs(cel_k - cel_r))))
    assert err_enc < 2e-2, f"encoder max abs err vs reference: {err_enc}"

    # (2) Full pipeline with full teacher forcing: parity against the pure-JAX reference.
    out_tf = full_fn(enc_params, dec_params, src, trg, tf_ones)
    jax.block_until_ready(out_tf)
    assert out_tf.shape == (T, B, V)
    ref_tf = seq2seq_reference_full(enc_params, dec_params, src, trg, tf_ones)
    err_tf = float(jnp.max(jnp.abs(out_tf - ref_tf)))
    assert err_tf < 2e-2, f"teacher-forced max abs err vs reference: {err_tf}"

    # (3) Mixed teacher forcing / greedy feedback: exercises the in-kernel argmax path.
    #     Kernel decoder and reference decoder are fed the SAME encoder state so the
    #     greedy decisions cannot drift from encoder-side rounding differences.
    out_mix = dec_fn(dec_params, trg, hid_k, cel_k, enc_k, tf_mix)
    jax.block_until_ready(out_mix)
    assert out_mix.shape == (T, B, V)
    assert bool(jnp.all(jnp.isfinite(out_mix)))
    ref_mix = decoder_reference(dec_params, trg, hid_k, cel_k, enc_k, tf_mix)
    err_mix = float(jnp.max(jnp.abs(out_mix - ref_mix)))
    assert err_mix < 2e-2, f"mixed-TF max abs err vs reference: {err_mix}"

    print("KERNEL_OK")
</pallas_src>

<mosaic_0001>
module attributes {stable_mosaic.version = 11 : i64} {
  func.func @encoder_kernel(%arg0: memref<8x8x128xf32, #tpu.memory_space<vmem>>, %arg1: memref<128x16xbf16, #tpu.memory_space<vmem>>, %arg2: memref<48x128xbf16, #tpu.memory_space<vmem>>, %arg3: memref<1x128xf32, #tpu.memory_space<vmem>>, %arg4: memref<64x128xbf16, #tpu.memory_space<vmem>>, %arg5: memref<1x128xf32, #tpu.memory_space<vmem>>, %arg6: memref<8x8x32xf32, #tpu.memory_space<vmem>>, %arg7: memref<2x8x32xf32, #tpu.memory_space<vmem>>, %arg8: memref<2x8x32xf32, #tpu.memory_space<vmem>>) attributes {dimension_semantics = [], scalar_prefetch = 0 : i64, scratch_operands = 0 : i64, tpu.core_type = #tpu.core_type<tc>} {
    %c0 = arith.constant 0 : index
    %c0_0 = arith.constant 0 : index
    %0 = vector.load %arg1[%c0, %c0_0] : memref<128x16xbf16, #tpu.memory_space<vmem>>, vector<128x16xbf16>
    %c0_1 = arith.constant 0 : index
    %c0_2 = arith.constant 0 : index
    %1 = vector.load %arg2[%c0_1, %c0_2] : memref<48x128xbf16, #tpu.memory_space<vmem>>, vector<48x128xbf16>
    %c0_3 = arith.constant 0 : index
    %c0_4 = arith.constant 0 : index
    %2 = vector.load %arg3[%c0_3, %c0_4] : memref<1x128xf32, #tpu.memory_space<vmem>>, vector<1x128xf32>
    %c0_5 = arith.constant 0 : index
    %c0_6 = arith.constant 0 : index
    %3 = vector.load %arg4[%c0_5, %c0_6] : memref<64x128xbf16, #tpu.memory_space<vmem>>, vector<64x128xbf16>
    %c0_7 = arith.constant 0 : index
    %c0_8 = arith.constant 0 : index
    %4 = vector.load %arg5[%c0_7, %c0_8] : memref<1x128xf32, #tpu.memory_space<vmem>>, vector<1x128xf32>
    %cst = arith.constant 0.000000e+00 : f32
    %5 = vector.broadcast %cst : f32 to vector<8x32xf32>
    %c0_i32 = arith.constant 0 : i32
    %6 = arith.index_cast %c0_i32 : i32 to index
    %c0_9 = arith.constant 0 : index
    %c0_10 = arith.constant 0 : index
    %7 = vector.load %arg0[%6, %c0_9, %c0_10] : memref<8x8x128xf32, #tpu.memory_space<vmem>>, vector<1x8x128xf32>
    %8 = vector.shape_cast %7 : vector<1x8x128xf32> to vector<8x128xf32>
    %9 = arith.truncf %8 : vector<8x128xf32> to vector<8x128xbf16>
    %cst_11 = arith.constant dense<0.000000e+00> : vector<8x16xf32>
    %10 = tpu.matmul %9, %0, %cst_11 {dimension_numbers = #tpu.dot_dimension_numbers<[1], [0], [0], [1], [0, 0, 1, 1], [], []>} : vector<8x128xbf16>, vector<128x16xbf16>, vector<8x16xf32> -> vector<8x16xf32>
    %11 = tpu.concatenate %10, %5 in 1 : vector<8x16xf32>, vector<8x32xf32> -> vector<8x48xf32>
    %12 = arith.truncf %11 : vector<8x48xf32> to vector<8x48xbf16>
    %cst_12 = arith.constant dense<0.000000e+00> : vector<8x128xf32>
    %13 = tpu.matmul %12, %1, %cst_12 {dimension_numbers = #tpu.dot_dimension_numbers<[1], [0], [0], [1], [0, 0, 1, 1], [], []>} : vector<8x48xbf16>, vector<48x128xbf16>, vector<8x128xf32> -> vector<8x128xf32>
    %14 = vector.broadcast %2 : vector<1x128xf32> to vector<8x128xf32>
    %15 = arith.addf %13, %14 : vector<8x128xf32>
    %16 = vector.extract_strided_slice %15 {offsets = [0, 0], sizes = [8, 32], strides = [1, 1]} : vector<8x128xf32> to vector<8x32xf32>
    %17 = arith.negf %16 : vector<8x32xf32>
    %18 = math.exp %17 : vector<8x32xf32>
    %cst_13 = arith.constant 1.000000e+00 : f32
    %19 = vector.broadcast %cst_13 : f32 to vector<8x32xf32>
    %20 = arith.addf %19, %18 : vector<8x32xf32>
    %21 = arith.divf %19, %20 : vector<8x32xf32>
    %22 = vector.extract_strided_slice %15 {offsets = [0, 32], sizes = [8, 32], strides = [1, 1]} : vector<8x128xf32> to vector<8x32xf32>
    %23 = arith.negf %22 : vector<8x32xf32>
    %24 = math.exp %23 : vector<8x32xf32>
    %cst_14 = arith.constant 1.000000e+00 : f32
    %25 = vector.broadcast %cst_14 : f32 to vector<8x32xf32>
    %26 = arith.addf %25, %24 : vector<8x32xf32>
    %27 = arith.divf %25, %26 : vector<8x32xf32>
    %28 = vector.extract_strided_slice %15 {offsets = [0, 64], sizes = [8, 32], strides = [1, 1]} : vector<8x128xf32> to vector<8x32xf32>
    %29 = math.tanh %28 : vector<8x32xf32>
    %30 = vector.extract_strided_slice %15 {offsets = [0, 96], sizes = [8, 32], strides = [1, 1]} : vector<8x128xf32> to vector<8x32xf32>
    %31 = arith.negf %30 : vector<8x32xf32>
    %32 = math.exp %31 : vector<8x32xf32>
    %cst_15 = arith.constant 1.000000e+00 : f32
    %33 = vector.broadcast %cst_15 : f32 to vector<8x32xf32>
    %34 = arith.addf %33, %32 : vector<8x32xf32>
    %35 = arith.divf %33, %34 : vector<8x32xf32>
    %36 = arith.mulf %27, %5 : vector<8x32xf32>
    %37 = arith.mulf %21, %29 : vector<8x32xf32>
    %38 = arith.addf %36, %37 : vector<8x32xf32>
    %39 = math.tanh %38 : vector<8x32xf32>
    %40 = arith.mulf %35, %39 : vector<8x32xf32>
    %41 = tpu.concatenate %40, %5 in 1 : vector<8x32xf32>, vector<8x32xf32> -> vector<8x64xf32>
    %42 = arith.truncf %41 : vector<8x64xf32> to vector<8x64xbf16>
    %cst_16 = arith.constant dense<0.000000e+00> : vector<8x128xf32>
    %43 = tpu.matmul %42, %3, %cst_16 {dimension_numbers = #tpu.dot_dimension_numbers<[1], [0], [0], [1], [0, 0, 1, 1], [], []>} : vector<8x64xbf16>, vector<64x128xbf16>, vector<8x128xf32> -> vector<8x128xf32>
    %44 = vector.broadcast %4 : vector<1x128xf32> to vector<8x128xf32>
    %45 = arith.addf %43, %44 : vector<8x128xf32>
    %46 = vector.extract_strided_slice %45 {offsets = [0, 0], sizes = [8, 32], strides = [1, 1]} : vector<8x128xf32> to vector<8x32xf32>
    %47 = arith.negf %46 : vector<8x32xf32>
    %48 = math.exp %47 : vector<8x32xf32>
    %cst_17 = arith.constant 1.000000e+00 : f32
    %49 = vector.broadcast %cst_17 : f32 to vector<8x32xf32>
    %50 = arith.addf %49, %48 : vector<8x32xf32>
    %51 = arith.divf %49, %50 : vector<8x32xf32>
    %52 = vector.extract_strided_slice %45 {offsets = [0, 32], sizes = [8, 32], strides = [1, 1]} : vector<8x128xf32> to vector<8x32xf32>
    %53 = arith.negf %52 : vector<8x32xf32>
    %54 = math.exp %53 : vector<8x32xf32>
    %cst_18 = arith.constant 1.000000e+00 : f32
    %55 = vector.broadcast %cst_18 : f32 to vector<8x32xf32>
    %56 = arith.addf %55, %54 : vector<8x32xf32>
    %57 = arith.divf %55, %56 : vector<8x32xf32>
    %58 = vector.extract_strided_slice %45 {offsets = [0, 64], sizes = [8, 32], strides = [1, 1]} : vector<8x128xf32> to vector<8x32xf32>
    %59 = math.tanh %58 : vector<8x32xf32>
    %60 = vector.extract_strided_slice %45 {offsets = [0, 96], sizes = [8, 32], strides = [1, 1]} : vector<8x128xf32> to vector<8x32xf32>
    %61 = arith.negf %60 : vector<8x32xf32>
    %62 = math.exp %61 : vector<8x32xf32>
    %cst_19 = arith.constant 1.000000e+00 : f32
    %63 = vector.broadcast %cst_19 : f32 to vector<8x32xf32>
    %64 = arith.addf %63, %62 : vector<8x32xf32>
    %65 = arith.divf %63, %64 : vector<8x32xf32>
    %66 = arith.mulf %57, %5 : vector<8x32xf32>
    %67 = arith.mulf %51, %59 : vector<8x32xf32>
    %68 = arith.addf %66, %67 : vector<8x32xf32>
    %69 = math.tanh %68 : vector<8x32xf32>
    %70 = arith.mulf %65, %69 : vector<8x32xf32>
    %71 = arith.index_cast %c0_i32 : i32 to index
    %c0_20 = arith.constant 0 : index
    %c0_21 = arith.constant 0 : index
    %72 = vector.load %arg6[%71, %c0_20, %c0_21] : memref<8x8x32xf32, #tpu.memory_space<vmem>>, vector<1x8x32xf32>
    %73 = vector.shape_cast %72 : vector<1x8x32xf32> to vector<8x32xf32>
    %74 = vector.shape_cast %70 : vector<8x32xf32> to vector<1x8x32xf32>
    tpu.vector_store %arg6[%71, %c0_20, %c0_21], %74 {strides = array<i32>} : memref<8x8x32xf32, #tpu.memory_space<vmem>>, vector<1x8x32xf32>,
    %c1_i32 = arith.constant 1 : i32
    %75 = arith.index_cast %c1_i32 : i32 to index
    %c0_22 = arith.constant 0 : index
    %c0_23 = arith.constant 0 : index
    %76 = vector.load %arg0[%75, %c0_22, %c0_23] : memref<8x8x128xf32, #tpu.memory_space<vmem>>, vector<1x8x128xf32>
    %77 = vector.shape_cast %76 : vector<1x8x128xf32> to vector<8x128xf32>
    %78 = arith.truncf %77 : vector<8x128xf32> to vector<8x128xbf16>
    %cst_24 = arith.constant dense<0.000000e+00> : vector<8x16xf32>
    %79 = tpu.matmul %78, %0, %cst_24 {dimension_numbers = #tpu.dot_dimension_numbers<[1], [0], [0], [1], [0, 0, 1, 1], [], []>} : vector<8x128xbf16>, vector<128x16xbf16>, vector<8x16xf32> -> vector<8x16xf32>
    %80 = tpu.concatenate %79, %40 in 1 : vector<8x16xf32>, vector<8x32xf32> -> vector<8x48xf32>
    %81 = arith.truncf %80 : vector<8x48xf32> to vector<8x48xbf16>
    %cst_25 = arith.constant dense<0.000000e+00> : vector<8x128xf32>
    %82 = tpu.matmul %81, %1, %cst_25 {dimension_numbers = #tpu.dot_dimension_numbers<[1], [0], [0], [1], [0, 0, 1, 1], [], []>} : vector<8x48xbf16>, vector<48x128xbf16>, vector<8x128xf32> -> vector<8x128xf32>
    %83 = vector.broadcast %2 : vector<1x128xf32> to vector<8x128xf32>
    %84 = arith.addf %82, %83 : vector<8x128xf32>
    %85 = vector.extract_strided_slice %84 {offsets = [0, 0], sizes = [8, 32], strides = [1, 1]} : vector<8x128xf32> to vector<8x32xf32>
    %86 = arith.negf %85 : vector<8x32xf32>
    %87 = math.exp %86 : vector<8x32xf32>
    %cst_26 = arith.constant 1.000000e+00 : f32
    %88 = vector.broadcast %cst_26 : f32 to vector<8x32xf32>
    %89 = arith.addf %88, %87 : vector<8x32xf32>
    %90 = arith.divf %88, %89 : vector<8x32xf32>
    %91 = vector.extract_strided_slice %84 {offsets = [0, 32], sizes = [8, 32], strides = [1, 1]} : vector<8x128xf32> to vector<8x32xf32>
    %92 = arith.negf %91 : vector<8x32xf32>
    %93 = math.exp %92 : vector<8x32xf32>
    %cst_27 = arith.constant 1.000000e+00 : f32
    %94 = vector.broadcast %cst_27 : f32 to vector<8x32xf32>
    %95 = arith.addf %94, %93 : vector<8x32xf32>
    %96 = arith.divf %94, %95 : vector<8x32xf32>
    %97 = vector.extract_strided_slice %84 {offsets = [0, 64], sizes = [8, 32], strides = [1, 1]} : vector<8x128xf32> to vector<8x32xf32>
    %98 = math.tanh %97 : vector<8x32xf32>
    %99 = vector.extract_strided_slice %84 {offsets = [0, 96], sizes = [8, 32], strides = [1, 1]} : vector<8x128xf32> to vector<8x32xf32>
    %100 = arith.negf %99 : vector<8x32xf32>
    %101 = math.exp %100 : vector<8x32xf32>
    %cst_28 = arith.constant 1.000000e+00 : f32
    %102 = vector.broadcast %cst_28 : f32 to vector<8x32xf32>
    %103 = arith.addf %102, %101 : vector<8x32xf32>
    %104 = arith.divf %102, %103 : vector<8x32xf32>
    %105 = arith.mulf %96, %38 : vector<8x32xf32>
    %106 = arith.mulf %90, %98 : vector<8x32xf32>
    %107 = arith.addf %105, %106 : vector<8x32xf32>
    %108 = math.tanh %107 : vector<8x32xf32>
    %109 = arith.mulf %104, %108 : vector<8x32xf32>
    %110 = tpu.concatenate %109, %70 in 1 : vector<8x32xf32>, vector<8x32xf32> -> vector<8x64xf32>
    %111 = arith.truncf %110 : vector<8x64xf32> to vector<8x64xbf16>
    %cst_29 = arith.constant dense<0.000000e+00> : vector<8x128xf32>
    %112 = tpu.matmul %111, %3, %cst_29 {dimension_numbers = #tpu.dot_dimension_numbers<[1], [0], [0], [1], [0, 0, 1, 1], [], []>} : vector<8x64xbf16>, vector<64x128xbf16>, vector<8x128xf32> -> vector<8x128xf32>
    %113 = vector.broadcast %4 : vector<1x128xf32> to vector<8x128xf32>
    %114 = arith.addf %112, %113 : vector<8x128xf32>
    %115 = vector.extract_strided_slice %114 {offsets = [0, 0], sizes = [8, 32], strides = [1, 1]} : vector<8x128xf32> to vector<8x32xf32>
    %116 = arith.negf %115 : vector<8x32xf32>
    %117 = math.exp %116 : vector<8x32xf32>
    %cst_30 = arith.constant 1.000000e+00 : f32
    %118 = vector.broadcast %cst_30 : f32 to vector<8x32xf32>
    %119 = arith.addf %118, %117 : vector<8x32xf32>
    %120 = arith.divf %118, %119 : vector<8x32xf32>
    %121 = vector.extract_strided_slice %114 {offsets = [0, 32], sizes = [8, 32], strides = [1, 1]} : vector<8x128xf32> to vector<8x32xf32>
    %122 = arith.negf %121 : vector<8x32xf32>
    %123 = math.exp %122 : vector<8x32xf32>
    %cst_31 = arith.constant 1.000000e+00 : f32
    %124 = vector.broadcast %cst_31 : f32 to vector<8x32xf32>
    %125 = arith.addf %124, %123 : vector<8x32xf32>
    %126 = arith.divf %124, %125 : vector<8x32xf32>
    %127 = vector.extract_strided_slice %114 {offsets = [0, 64], sizes = [8, 32], strides = [1, 1]} : vector<8x128xf32> to vector<8x32xf32>
    %128 = math.tanh %127 : vector<8x32xf32>
    %129 = vector.extract_strided_slice %114 {offsets = [0, 96], sizes = [8, 32], strides = [1, 1]} : vector<8x128xf32> to vector<8x32xf32>
    %130 = arith.negf %129 : vector<8x32xf32>
    %131 = math.exp %130 : vector<8x32xf32>
    %cst_32 = arith.constant 1.000000e+00 : f32
    %132 = vector.broadcast %cst_32 : f32 to vector<8x32xf32>
    %133 = arith.addf %132, %131 : vector<8x32xf32>
    %134 = arith.divf %132, %133 : vector<8x32xf32>
    %135 = arith.mulf %126, %68 : vector<8x32xf32>
    %136 = arith.mulf %120, %128 : vector<8x32xf32>
    %137 = arith.addf %135, %136 : vector<8x32xf32>
    %138 = math.tanh %137 : vector<8x32xf32>
    %139 = arith.mulf %134, %138 : vector<8x32xf32>
    %140 = arith.index_cast %c1_i32 : i32 to index
    %c0_33 = arith.constant 0 : index
    %c0_34 = arith.constant 0 : index
    %141 = vector.load %arg6[%140, %c0_33, %c0_34] : memref<8x8x32xf32, #tpu.memory_space<vmem>>, vector<1x8x32xf32>
    %142 = vector.shape_cast %141 : vector<1x8x32xf32> to vector<8x32xf32>
    %143 = vector.shape_cast %139 : vector<8x32xf32> to vector<1x8x32xf32>
    tpu.vector_store %arg6[%140, %c0_33, %c0_34], %143 {strides = array<i32>} : memref<8x8x32xf32, #tpu.memory_space<vmem>>, vector<1x8x32xf32>,
    %c2_i32 = arith.constant 2 : i32
    %144 = arith.index_cast %c2_i32 : i32 to index
    %c0_35 = arith.constant 0 : index
    %c0_36 = arith.constant 0 : index
    %145 = vector.load %arg0[%144, %c0_35, %c0_36] : memref<8x8x128xf32, #tpu.memory_space<vmem>>, vector<1x8x128xf32>
    %146 = vector.shape_cast %145 : vector<1x8x128xf32> to vector<8x128xf32>
    %147 = arith.truncf %146 : vector<8x128xf32> to vector<8x128xbf16>
    %cst_37 = arith.constant dense<0.000000e+00> : vector<8x16xf32>
    %148 = tpu.matmul %147, %0, %cst_37 {dimension_numbers = #tpu.dot_dimension_numbers<[1], [0], [0], [1], [0, 0, 1, 1], [], []>} : vector<8x128xbf16>, vector<128x16xbf16>, vector<8x16xf32> -> vector<8x16xf32>
    %149 = tpu.concatenate %148, %109 in 1 : vector<8x16xf32>, vector<8x32xf32> -> vector<8x48xf32>
    %150 = arith.truncf %149 : vector<8x48xf32> to vector<8x48xbf16>
    %cst_38 = arith.constant dense<0.000000e+00> : vector<8x128xf32>
    %151 = tpu.matmul %150, %1, %cst_38 {dimension_numbers = #tpu.dot_dimension_numbers<[1], [0], [0], [1], [0, 0, 1, 1], [], []>} : vector<8x48xbf16>, vector<48x128xbf16>, vector<8x128xf32> -> vector<8x128xf32>
    %152 = vector.broadcast %2 : vector<1x128xf32> to vector<8x128xf32>
    %153 = arith.addf %151, %152 : vector<8x128xf32>
    %154 = vector.extract_strided_slice %153 {offsets = [0, 0], sizes = [8, 32], strides = [1, 1]} : vector<8x128xf32> to vector<8x32xf32>
    %155 = arith.negf %154 : vector<8x32xf32>
    %156 = math.exp %155 : vector<8x32xf32>
    %cst_39 = arith.constant 1.000000e+00 : f32
    %157 = vector.broadcast %cst_39 : f32 to vector<8x32xf32>
    %158 = arith.addf %157, %156 : vector<8x32xf32>
    %159 = arith.divf %157, %158 : vector<8x32xf32>
    %160 = vector.extract_strided_slice %153 {offsets = [0, 32], sizes = [8, 32], strides = [1, 1]} : vector<8x128xf32> to vector<8x32xf32>
    %161 = arith.negf %160 : vector<8x32xf32>
    %162 = math.exp %161 : vector<8x32xf32>
    %cst_40 = arith.constant 1.000000e+00 : f32
    %163 = vector.broadcast %cst_40 : f32 to vector<8x32xf32>
    %164 = arith.addf %163, %162 : vector<8x32xf32>
    %165 = arith.divf %163, %164 : vector<8x32xf32>
    %166 = vector.extract_strided_slice %153 {offsets = [0, 64], sizes = [8, 32], strides = [1, 1]} : vector<8x128xf32> to vector<8x32xf32>
    %167 = math.tanh %166 : vector<8x32xf32>
    %168 = vector.extract_strided_slice %153 {offsets = [0, 96], sizes = [8, 32], strides = [1, 1]} : vector<8x128xf32> to vector<8x32xf32>
    %169 = arith.negf %168 : vector<8x32xf32>
    %170 = math.exp %169 : vector<8x32xf32>
    %cst_41 = arith.constant 1.000000e+00 : f32
    %171 = vector.broadcast %cst_41 : f32 to vector<8x32xf32>
    %172 = arith.addf %171, %170 : vector<8x32xf32>
    %173 = arith.divf %171, %172 : vector<8x32xf32>
    %174 = arith.mulf %165, %107 : vector<8x32xf32>
    %175 = arith.mulf %159, %167 : vector<8x32xf32>
    %176 = arith.addf %174, %175 : vector<8x32xf32>
    %177 = math.tanh %176 : vector<8x32xf32>
    %178 = arith.mulf %173, %177 : vector<8x32xf32>
    %179 = tpu.concatenate %178, %139 in 1 : vector<8x32xf32>, vector<8x32xf32> -> vector<8x64xf32>
    %180 = arith.truncf %179 : vector<8x64xf32> to vector<8x64xbf16>
    %cst_42 = arith.constant dense<0.000000e+00> : vector<8x128xf32>
    %181 = tpu.matmul %180, %3, %cst_42 {dimension_numbers = #tpu.dot_dimension_numbers<[1], [0], [0], [1], [0, 0, 1, 1], [], []>} : vector<8x64xbf16>, vector<64x128xbf16>, vector<8x128xf32> -> vector<8x128xf32>
    %182 = vector.broadcast %4 : vector<1x128xf32> to vector<8x128xf32>
    %183 = arith.addf %181, %182 : vector<8x128xf32>
    %184 = vector.extract_strided_slice %183 {offsets = [0, 0], sizes = [8, 32], strides = [1, 1]} : vector<8x128xf32> to vector<8x32xf32>
    %185 = arith.negf %184 : vector<8x32xf32>
    %186 = math.exp %185 : vector<8x32xf32>
    %cst_43 = arith.constant 1.000000e+00 : f32
    %187 = vector.broadcast %cst_43 : f32 to vector<8x32xf32>
    %188 = arith.addf %187, %186 : vector<8x32xf32>
    %189 = arith.divf %187, %188 : vector<8x32xf32>
    %190 = vector.extract_strided_slice %183 {offsets = [0, 32], sizes = [8, 32], strides = [1, 1]} : vector<8x128xf32> to vector<8x32xf32>
    %191 = arith.negf %190 : vector<8x32xf32>
    %192 = math.exp %191 : vector<8x32xf32>
    %cst_44 = arith.constant 1.000000e+00 : f32
    %193 = vector.broadcast %cst_44 : f32 to vector<8x32xf32>
    %194 = arith.addf %193, %192 : vector<8x32xf32>
    %195 = arith.divf %193, %194 : vector<8x32xf32>
    %196 = vector.extract_strided_slice %183 {offsets = [0, 64], sizes = [8, 32], strides = [1, 1]} : vector<8x128xf32> to vector<8x32xf32>
    %197 = math.tanh %196 : vector<8x32xf32>
    %198 = vector.extract_strided_slice %183 {offsets = [0, 96], sizes = [8, 32], strides = [1, 1]} : vector<8x128xf32> to vector<8x32xf32>
    %199 = arith.negf %198 : vector<8x32xf32>
    %200 = math.exp %199 : vector<8x32xf32>
    %cst_45 = arith.constant 1.000000e+00 : f32
    %201 = vector.broadcast %cst_45 : f32 to vector<8x32xf32>
    %202 = arith.addf %201, %200 : vector<8x32xf32>
    %203 = arith.divf %201, %202 : vector<8x32xf32>
    %204 = arith.mulf %195, %137 : vector<8x32xf32>
    %205 = arith.mulf %189, %197 : vector<8x32xf32>
    %206 = arith.addf %204, %205 : vector<8x32xf32>
    %207 = math.tanh %206 : vector<8x32xf32>
    %208 = arith.mulf %203, %207 : vector<8x32xf32>
    %209 = arith.index_cast %c2_i32 : i32 to index
    %c0_46 = arith.constant 0 : index
    %c0_47 = arith.constant 0 : index
    %210 = vector.load %arg6[%209, %c0_46, %c0_47] : memref<8x8x32xf32, #tpu.memory_space<vmem>>, vector<1x8x32xf32>
    %211 = vector.shape_cast %210 : vector<1x8x32xf32> to vector<8x32xf32>
    %212 = vector.shape_cast %208 : vector<8x32xf32> to vector<1x8x32xf32>
    tpu.vector_store %arg6[%209, %c0_46, %c0_47], %212 {strides = array<i32>} : memref<8x8x32xf32, #tpu.memory_space<vmem>>, vector<1x8x32xf32>,
    %c3_i32 = arith.constant 3 : i32
    %213 = arith.index_cast %c3_i32 : i32 to index
    %c0_48 = arith.constant 0 : index
    %c0_49 = arith.constant 0 : index
    %214 = vector.load %arg0[%213, %c0_48, %c0_49] : memref<8x8x128xf32, #tpu.memory_space<vmem>>, vector<1x8x128xf32>
    %215 = vector.shape_cast %214 : vector<1x8x128xf32> to vector<8x128xf32>
    %216 = arith.truncf %215 : vector<8x128xf32> to vector<8x128xbf16>
    %cst_50 = arith.constant dense<0.000000e+00> : vector<8x16xf32>
    %217 = tpu.matmul %216, %0, %cst_50 {dimension_numbers = #tpu.dot_dimension_numbers<[1], [0], [0], [1], [0, 0, 1, 1], [], []>} : vector<8x128xbf16>, vector<128x16xbf16>, vector<8x16xf32> -> vector<8x16xf32>
    %218 = tpu.concatenate %217, %178 in 1 : vector<8x16xf32>, vector<8x32xf32> -> vector<8x48xf32>
    %219 = arith.truncf %218 : vector<8x48xf32> to vector<8x48xbf16>
    %cst_51 = arith.constant dense<0.000000e+00> : vector<8x128xf32>
    %220 = tpu.matmul %219, %1, %cst_51 {dimension_numbers = #tpu.dot_dimension_numbers<[1], [0], [0], [1], [0, 0, 1, 1], [], []>} : vector<8x48xbf16>, vector<48x128xbf16>, vector<8x128xf32> -> vector<8x128xf32>
    %221 = vector.broadcast %2 : vector<1x128xf32> to vector<8x128xf32>
    %222 = arith.addf %220, %221 : vector<8x128xf32>
    %223 = vector.extract_strided_slice %222 {offsets = [0, 0], sizes = [8, 32], strides = [1, 1]} : vector<8x128xf32> to vector<8x32xf32>
    %224 = arith.negf %223 : vector<8x32xf32>
    %225 = math.exp %224 : vector<8x32xf32>
    %cst_52 = arith.constant 1.000000e+00 : f32
    %226 = vector.broadcast %cst_52 : f32 to vector<8x32xf32>
    %227 = arith.addf %226, %225 : vector<8x32xf32>
    %228 = arith.divf %226, %227 : vector<8x32xf32>
    %229 = vector.extract_strided_slice %222 {offsets = [0, 32], sizes = [8, 32], strides = [1, 1]} : vector<8x128xf32> to vector<8x32xf32>
    %230 = arith.negf %229 : vector<8x32xf32>
    %231 = math.exp %230 : vector<8x32xf32>
    %cst_53 = arith.constant 1.000000e+00 : f32
    %232 = vector.broadcast %cst_53 : f32 to vector<8x32xf32>
    %233 = arith.addf %232, %231 : vector<8x32xf32>
    %234 = arith.divf %232, %233 : vector<8x32xf32>
    %235 = vector.extract_strided_slice %222 {offsets = [0, 64], sizes = [8, 32], strides = [1, 1]} : vector<8x128xf32> to vector<8x32xf32>
    %236 = math.tanh %235 : vector<8x32xf32>
    %237 = vector.extract_strided_slice %222 {offsets = [0, 96], sizes = [8, 32], strides = [1, 1]} : vector<8x128xf32> to vector<8x32xf32>
    %238 = arith.negf %237 : vector<8x32xf32>
    %239 = math.exp %238 : vector<8x32xf32>
    %cst_54 = arith.constant 1.000000e+00 : f32
    %240 = vector.broadcast %cst_54 : f32 to vector<8x32xf32>
    %241 = arith.addf %240, %239 : vector<8x32xf32>
    %242 = arith.divf %240, %241 : vector<8x32xf32>
    %243 = arith.mulf %234, %176 : vector<8x32xf32>
    %244 = arith.mulf %228, %236 : vector<8x32xf32>
    %245 = arith.addf %243, %244 : vector<8x32xf32>
    %246 = math.tanh %245 : vector<8x32xf32>
    %247 = arith.mulf %242, %246 : vector<8x32xf32>
    %248 = tpu.concatenate %247, %208 in 1 : vector<8x32xf32>, vector<8x32xf32> -> vector<8x64xf32>
    %249 = arith.truncf %248 : vector<8x64xf32> to vector<8x64xbf16>
    %cst_55 = arith.constant dense<0.000000e+00> : vector<8x128xf32>
    %250 = tpu.matmul %249, %3, %cst_55 {dimension_numbers = #tpu.dot_dimension_numbers<[1], [0], [0], [1], [0, 0, 1, 1], [], []>} : vector<8x64xbf16>, vector<64x128xbf16>, vector<8x128xf32> -> vector<8x128xf32>
    %251 = vector.broadcast %4 : vector<1x128xf32> to vector<8x128xf32>
    %252 = arith.addf %250, %251 : vector<8x128xf32>
    %253 = vector.extract_strided_slice %252 {offsets = [0, 0], sizes = [8, 32], strides = [1, 1]} : vector<8x128xf32> to vector<8x32xf32>
    %254 = arith.negf %253 : vector<8x32xf32>
    %255 = math.exp %254 : vector<8x32xf32>
    %cst_56 = arith.constant 1.000000e+00 : f32
    %256 = vector.broadcast %cst_56 : f32 to vector<8x32xf32>
    %257 = arith.addf %256, %255 : vector<8x32xf32>
    %258 = arith.divf %256, %257 : vector<8x32xf32>
    %259 = vector.extract_strided_slice %252 {offsets = [0, 32], sizes = [8, 32], strides = [1, 1]} : vector<8x128xf32> to vector<8x32xf32>
    %260 = arith.negf %259 : vector<8x32xf32>
    %261 = math.exp %260 : vector<8x32xf32>
    %cst_57 = arith.constant 1.000000e+00 : f32
    %262 = vector.broadcast %cst_57 : f32 to vector<8x32xf32>
    %263 = arith.addf %262, %261 : vector<8x32xf32>
    %264 = arith.divf %262, %263 : vector<8x32xf32>
    %265 = vector.extract_strided_slice %252 {offsets = [0, 64], sizes = [8, 32], strides = [1, 1]} : vector<8x128xf32> to vector<8x32xf32>
    %266 = math.tanh %265 : vector<8x32xf32>
    %267 = vector.extract_strided_slice %252 {offsets = [0, 96], sizes = [8, 32], strides = [1, 1]} : vector<8x128xf32> to vector<8x32xf32>
    %268 = arith.negf %267 : vector<8x32xf32>
    %269 = math.exp %268 : vector<8x32xf32>
    %cst_58 = arith.constant 1.000000e+00 : f32
    %270 = vector.broadcast %cst_58 : f32 to vector<8x32xf32>
    %271 = arith.addf %270, %269 : vector<8x32xf32>
    %272 = arith.divf %270, %271 : vector<8x32xf32>
    %273 = arith.mulf %264, %206 : vector<8x32xf32>
    %274 = arith.mulf %258, %266 : vector<8x32xf32>
    %275 = arith.addf %273, %274 : vector<8x32xf32>
    %276 = math.tanh %275 : vector<8x32xf32>
    %277 = arith.mulf %272, %276 : vector<8x32xf32>
    %278 = arith.index_cast %c3_i32 : i32 to index
    %c0_59 = arith.constant 0 : index
    %c0_60 = arith.constant 0 : index
    %279 = vector.load %arg6[%278, %c0_59, %c0_60] : memref<8x8x32xf32, #tpu.memory_space<vmem>>, vector<1x8x32xf32>
    %280 = vector.shape_cast %279 : vector<1x8x32xf32> to vector<8x32xf32>
    %281 = vector.shape_cast %277 : vector<8x32xf32> to vector<1x8x32xf32>
    tpu.vector_store %arg6[%278, %c0_59, %c0_60], %281 {strides = array<i32>} : memref<8x8x32xf32, #tpu.memory_space<vmem>>, vector<1x8x32xf32>,
    %c4_i32 = arith.constant 4 : i32
    %282 = arith.index_cast %c4_i32 : i32 to index
    %c0_61 = arith.constant 0 : index
    %c0_62 = arith.constant 0 : index
    %283 = vector.load %arg0[%282, %c0_61, %c0_62] : memref<8x8x128xf32, #tpu.memory_space<vmem>>, vector<1x8x128xf32>
    %284 = vector.shape_cast %283 : vector<1x8x128xf32> to vector<8x128xf32>
    %285 = arith.truncf %284 : vector<8x128xf32> to vector<8x128xbf16>
    %cst_63 = arith.constant dense<0.000000e+00> : vector<8x16xf32>
    %286 = tpu.matmul %285, %0, %cst_63 {dimension_numbers = #tpu.dot_dimension_numbers<[1], [0], [0], [1], [0, 0, 1, 1], [], []>} : vector<8x128xbf16>, vector<128x16xbf16>, vector<8x16xf32> -> vector<8x16xf32>
    %287 = tpu.concatenate %286, %247 in 1 : vector<8x16xf32>, vector<8x32xf32> -> vector<8x48xf32>
    %288 = arith.truncf %287 : vector<8x48xf32> to vector<8x48xbf16>
    %cst_64 = arith.constant dense<0.000000e+00> : vector<8x128xf32>
    %289 = tpu.matmul %288, %1, %cst_64 {dimension_numbers = #tpu.dot_dimension_numbers<[1], [0], [0], [1], [0, 0, 1, 1], [], []>} : vector<8x48xbf16>, vector<48x128xbf16>, vector<8x128xf32> -> vector<8x128xf32>
    %290 = vector.broadcast %2 : vector<1x128xf32> to vector<8x128xf32>
    %291 = arith.addf %289, %290 : vector<8x128xf32>
    %292 = vector.extract_strided_slice %291 {offsets = [0, 0], sizes = [8, 32], strides = [1, 1]} : vector<8x128xf32> to vector<8x32xf32>
    %293 = arith.negf %292 : vector<8x32xf32>
    %294 = math.exp %293 : vector<8x32xf32>
    %cst_65 = arith.constant 1.000000e+00 : f32
    %295 = vector.broadcast %cst_65 : f32 to vector<8x32xf32>
    %296 = arith.addf %295, %294 : vector<8x32xf32>
    %297 = arith.divf %295, %296 : vector<8x32xf32>
    %298 = vector.extract_strided_slice %291 {offsets = [0, 32], sizes = [8, 32], strides = [1, 1]} : vector<8x128xf32> to vector<8x32xf32>
    %299 = arith.negf %298 : vector<8x32xf32>
    %300 = math.exp %299 : vector<8x32xf32>
    %cst_66 = arith.constant 1.000000e+00 : f32
    %301 = vector.broadcast %cst_66 : f32 to vector<8x32xf32>
    %302 = arith.addf %301, %300 : vector<8x32xf32>
    %303 = arith.divf %301, %302 : vector<8x32xf32>
    %304 = vector.extract_strided_slice %291 {offsets = [0, 64], sizes = [8, 32], strides = [1, 1]} : vector<8x128xf32> to vector<8x32xf32>
    %305 = math.tanh %304 : vector<8x32xf32>
    %306 = vector.extract_strided_slice %291 {offsets = [0, 96], sizes = [8, 32], strides = [1, 1]} : vector<8x128xf32> to vector<8x32xf32>
    %307 = arith.negf %306 : vector<8x32xf32>
    %308 = math.exp %307 : vector<8x32xf32>
    %cst_67 = arith.constant 1.000000e+00 : f32
    %309 = vector.broadcast %cst_67 : f32 to vector<8x32xf32>
    %310 = arith.addf %309, %308 : vector<8x32xf32>
    %311 = arith.divf %309, %310 : vector<8x32xf32>
    %312 = arith.mulf %303, %245 : vector<8x32xf32>
    %313 = arith.mulf %297, %305 : vector<8x32xf32>
    %314 = arith.addf %312, %313 : vector<8x32xf32>
    %315 = math.tanh %314 : vector<8x32xf32>
    %316 = arith.mulf %311, %315 : vector<8x32xf32>
    %317 = tpu.concatenate %316, %277 in 1 : vector<8x32xf32>, vector<8x32xf32> -> vector<8x64xf32>
    %318 = arith.truncf %317 : vector<8x64xf32> to vector<8x64xbf16>
    %cst_68 = arith.constant dense<0.000000e+00> : vector<8x128xf32>
    %319 = tpu.matmul %318, %3, %cst_68 {dimension_numbers = #tpu.dot_dimension_numbers<[1], [0], [0], [1], [0, 0, 1, 1], [], []>} : vector<8x64xbf16>, vector<64x128xbf16>, vector<8x128xf32> -> vector<8x128xf32>
    %320 = vector.broadcast %4 : vector<1x128xf32> to vector<8x128xf32>
    %321 = arith.addf %319, %320 : vector<8x128xf32>
    %322 = vector.extract_strided_slice %321 {offsets = [0, 0], sizes = [8, 32], strides = [1, 1]} : vector<8x128xf32> to vector<8x32xf32>
    %323 = arith.negf %322 : vector<8x32xf32>
    %324 = math.exp %323 : vector<8x32xf32>
    %cst_69 = arith.constant 1.000000e+00 : f32
    %325 = vector.broadcast %cst_69 : f32 to vector<8x32xf32>
    %326 = arith.addf %325, %324 : vector<8x32xf32>
    %327 = arith.divf %325, %326 : vector<8x32xf32>
    %328 = vector.extract_strided_slice %321 {offsets = [0, 32], sizes = [8, 32], strides = [1, 1]} : vector<8x128xf32> to vector<8x32xf32>
    %329 = arith.negf %328 : vector<8x32xf32>
    %330 = math.exp %329 : vector<8x32xf32>
    %cst_70 = arith.constant 1.000000e+00 : f32
    %331 = vector.broadcast %cst_70 : f32 to vector<8x32xf32>
    %332 = arith.addf %331, %330 : vector<8x32xf32>
    %333 = arith.divf %331, %332 : vector<8x32xf32>
    %334 = vector.extract_strided_slice %321 {offsets = [0, 64], sizes = [8, 32], strides = [1, 1]} : vector<8x128xf32> to vector<8x32xf32>
    %335 = math.tanh %334 : vector<8x32xf32>
    %336 = vector.extract_strided_slice %321 {offsets = [0, 96], sizes = [8, 32], strides = [1, 1]} : vector<8x128xf32> to vector<8x32xf32>
    %337 = arith.negf %336 : vector<8x32xf32>
    %338 = math.exp %337 : vector<8x32xf32>
    %cst_71 = arith.constant 1.000000e+00 : f32
    %339 = vector.broadcast %cst_71 : f32 to vector<8x32xf32>
    %340 = arith.addf %339, %338 : vector<8x32xf32>
    %341 = arith.divf %339, %340 : vector<8x32xf32>
    %342 = arith.mulf %333, %275 : vector<8x32xf32>
    %343 = arith.mulf %327, %335 : vector<8x32xf32>
    %344 = arith.addf %342, %343 : vector<8x32xf32>
    %345 = math.tanh %344 : vector<8x32xf32>
    %346 = arith.mulf %341, %345 : vector<8x32xf32>
    %347 = arith.index_cast %c4_i32 : i32 to index
    %c0_72 = arith.constant 0 : index
    %c0_73 = arith.constant 0 : index
    %348 = vector.load %arg6[%347, %c0_72, %c0_73] : memref<8x8x32xf32, #tpu.memory_space<vmem>>, vector<1x8x32xf32>
    %349 = vector.shape_cast %348 : vector<1x8x32xf32> to vector<8x32xf32>
    %350 = vector.shape_cast %346 : vector<8x32xf32> to vector<1x8x32xf32>
    tpu.vector_store %arg6[%347, %c0_72, %c0_73], %350 {strides = array<i32>} : memref<8x8x32xf32, #tpu.memory_space<vmem>>, vector<1x8x32xf32>,
    %c5_i32 = arith.constant 5 : i32
    %351 = arith.index_cast %c5_i32 : i32 to index
    %c0_74 = arith.constant 0 : index
    %c0_75 = arith.constant 0 : index
    %352 = vector.load %arg0[%351, %c0_74, %c0_75] : memref<8x8x128xf32, #tpu.memory_space<vmem>>, vector<1x8x128xf32>
    %353 = vector.shape_cast %352 : vector<1x8x128xf32> to vector<8x128xf32>
    %354 = arith.truncf %353 : vector<8x128xf32> to vector<8x128xbf16>
    %cst_76 = arith.constant dense<0.000000e+00> : vector<8x16xf32>
    %355 = tpu.matmul %354, %0, %cst_76 {dimension_numbers = #tpu.dot_dimension_numbers<[1], [0], [0], [1], [0, 0, 1, 1], [], []>} : vector<8x128xbf16>, vector<128x16xbf16>, vector<8x16xf32> -> vector<8x16xf32>
    %356 = tpu.concatenate %355, %316 in 1 : vector<8x16xf32>, vector<8x32xf32> -> vector<8x48xf32>
    %357 = arith.truncf %356 : vector<8x48xf32> to vector<8x48xbf16>
    %cst_77 = arith.constant dense<0.000000e+00> : vector<8x128xf32>
    %358 = tpu.matmul %357, %1, %cst_77 {dimension_numbers = #tpu.dot_dimension_numbers<[1], [0], [0], [1], [0, 0, 1, 1], [], []>} : vector<8x48xbf16>, vector<48x128xbf16>, vector<8x128xf32> -> vector<8x128xf32>
    %359 = vector.broadcast %2 : vector<1x128xf32> to vector<8x128xf32>
    %360 = arith.addf %358, %359 : vector<8x128xf32>
    %361 = vector.extract_strided_slice %360 {offsets = [0, 0], sizes = [8, 32], strides = [1, 1]} : vector<8x128xf32> to vector<8x32xf32>
    %362 = arith.negf %361 : vector<8x32xf32>
    %363 = math.exp %362 : vector<8x32xf32>
    %cst_78 = arith.constant 1.000000e+00 : f32
    %364 = vector.broadcast %cst_78 : f32 to vector<8x32xf32>
    %365 = arith.addf %364, %363 : vector<8x32xf32>
    %366 = arith.divf %364, %365 : vector<8x32xf32>
    %367 = vector.extract_strided_slice %360 {offsets = [0, 32], sizes = [8, 32], strides = [1, 1]} : vector<8x128xf32> to vector<8x32xf32>
    %368 = arith.negf %367 : vector<8x32xf32>
    %369 = math.exp %368 : vector<8x32xf32>
    %cst_79 = arith.constant 1.000000e+00 : f32
    %370 = vector.broadcast %cst_79 : f32 to vector<8x32xf32>
    %371 = arith.addf %370, %369 : vector<8x32xf32>
    %372 = arith.divf %370, %371 : vector<8x32xf32>
    %373 = vector.extract_strided_slice %360 {offsets = [0, 64], sizes = [8, 32], strides = [1, 1]} : vector<8x128xf32> to vector<8x32xf32>
    %374 = math.tanh %373 : vector<8x32xf32>
    %375 = vector.extract_strided_slice %360 {offsets = [0, 96], sizes = [8, 32], strides = [1, 1]} : vector<8x128xf32> to vector<8x32xf32>
    %376 = arith.negf %375 : vector<8x32xf32>
    %377 = math.exp %376 : vector<8x32xf32>
    %cst_80 = arith.constant 1.000000e+00 : f32
    %378 = vector.broadcast %cst_80 : f32 to vector<8x32xf32>
    %379 = arith.addf %378, %377 : vector<8x32xf32>
    %380 = arith.divf %378, %379 : vector<8x32xf32>
    %381 = arith.mulf %372, %314 : vector<8x32xf32>
    %382 = arith.mulf %366, %374 : vector<8x32xf32>
    %383 = arith.addf %381, %382 : vector<8x32xf32>
    %384 = math.tanh %383 : vector<8x32xf32>
    %385 = arith.mulf %380, %384 : vector<8x32xf32>
    %386 = tpu.concatenate %385, %346 in 1 : vector<8x32xf32>, vector<8x32xf32> -> vector<8x64xf32>
    %387 = arith.truncf %386 : vector<8x64xf32> to vector<8x64xbf16>
    %cst_81 = arith.constant dense<0.000000e+00> : vector<8x128xf32>
    %388 = tpu.matmul %387, %3, %cst_81 {dimension_numbers = #tpu.dot_dimension_numbers<[1], [0], [0], [1], [0, 0, 1, 1], [], []>} : vector<8x64xbf16>, vector<64x128xbf16>, vector<8x128xf32> -> vector<8x128xf32>
    %389 = vector.broadcast %4 : vector<1x128xf32> to vector<8x128xf32>
    %390 = arith.addf %388, %389 : vector<8x128xf32>
    %391 = vector.extract_strided_slice %390 {offsets = [0, 0], sizes = [8, 32], strides = [1, 1]} : vector<8x128xf32> to vector<8x32xf32>
    %392 = arith.negf %391 : vector<8x32xf32>
    %393 = math.exp %392 : vector<8x32xf32>
    %cst_82 = arith.constant 1.000000e+00 : f32
    %394 = vector.broadcast %cst_82 : f32 to vector<8x32xf32>
    %395 = arith.addf %394, %393 : vector<8x32xf32>
    %396 = arith.divf %394, %395 : vector<8x32xf32>
    %397 = vector.extract_strided_slice %390 {offsets = [0, 32], sizes = [8, 32], strides = [1, 1]} : vector<8x128xf32> to vector<8x32xf32>
    %398 = arith.negf %397 : vector<8x32xf32>
    %399 = math.exp %398 : vector<8x32xf32>
    %cst_83 = arith.constant 1.000000e+00 : f32
    %400 = vector.broadcast %cst_83 : f32 to vector<8x32xf32>
    %401 = arith.addf %400, %399 : vector<8x32xf32>
    %402 = arith.divf %400, %401 : vector<8x32xf32>
    %403 = vector.extract_strided_slice %390 {offsets = [0, 64], sizes = [8, 32], strides = [1, 1]} : vector<8x128xf32> to vector<8x32xf32>
    %404 = math.tanh %403 : vector<8x32xf32>
    %405 = vector.extract_strided_slice %390 {offsets = [0, 96], sizes = [8, 32], strides = [1, 1]} : vector<8x128xf32> to vector<8x32xf32>
    %406 = arith.negf %405 : vector<8x32xf32>
    %407 = math.exp %406 : vector<8x32xf32>
    %cst_84 = arith.constant 1.000000e+00 : f32
    %408 = vector.broadcast %cst_84 : f32 to vector<8x32xf32>
    %409 = arith.addf %408, %407 : vector<8x32xf32>
    %410 = arith.divf %408, %409 : vector<8x32xf32>
    %411 = arith.mulf %402, %344 : vector<8x32xf32>
    %412 = arith.mulf %396, %404 : vector<8x32xf32>
    %413 = arith.addf %411, %412 : vector<8x32xf32>
    %414 = math.tanh %413 : vector<8x32xf32>
    %415 = arith.mulf %410, %414 : vector<8x32xf32>
    %416 = arith.index_cast %c5_i32 : i32 to index
    %c0_85 = arith.constant 0 : index
    %c0_86 = arith.constant 0 : index
    %417 = vector.load %arg6[%416, %c0_85, %c0_86] : memref<8x8x32xf32, #tpu.memory_space<vmem>>, vector<1x8x32xf32>
    %418 = vector.shape_cast %417 : vector<1x8x32xf32> to vector<8x32xf32>
    %419 = vector.shape_cast %415 : vector<8x32xf32> to vector<1x8x32xf32>
    tpu.vector_store %arg6[%416, %c0_85, %c0_86], %419 {strides = array<i32>} : memref<8x8x32xf32, #tpu.memory_space<vmem>>, vector<1x8x32xf32>,
    %c6_i32 = arith.constant 6 : i32
    %420 = arith.index_cast %c6_i32 : i32 to index
    %c0_87 = arith.constant 0 : index
    %c0_88 = arith.constant 0 : index
    %421 = vector.load %arg0[%420, %c0_87, %c0_88] : memref<8x8x128xf32, #tpu.memory_space<vmem>>, vector<1x8x128xf32>
    %422 = vector.shape_cast %421 : vector<1x8x128xf32> to vector<8x128xf32>
    %423 = arith.truncf %422 : vector<8x128xf32> to vector<8x128xbf16>
    %cst_89 = arith.constant dense<0.000000e+00> : vector<8x16xf32>
    %424 = tpu.matmul %423, %0, %cst_89 {dimension_numbers = #tpu.dot_dimension_numbers<[1], [0], [0], [1], [0, 0, 1, 1], [], []>} : vector<8x128xbf16>, vector<128x16xbf16>, vector<8x16xf32> -> vector<8x16xf32>
    %425 = tpu.concatenate %424, %385 in 1 : vector<8x16xf32>, vector<8x32xf32> -> vector<8x48xf32>
    %426 = arith.truncf %425 : vector<8x48xf32> to vector<8x48xbf16>
    %cst_90 = arith.constant dense<0.000000e+00> : vector<8x128xf32>
    %427 = tpu.matmul %426, %1, %cst_90 {dimension_numbers = #tpu.dot_dimension_numbers<[1], [0], [0], [1], [0, 0, 1, 1], [], []>} : vector<8x48xbf16>, vector<48x128xbf16>, vector<8x128xf32> -> vector<8x128xf32>
    %428 = vector.broadcast %2 : vector<1x128xf32> to vector<8x128xf32>
    %429 = arith.addf %427, %428 : vector<8x128xf32>
    %430 = vector.extract_strided_slice %429 {offsets = [0, 0], sizes = [8, 32], strides = [1, 1]} : vector<8x128xf32> to vector<8x32xf32>
    %431 = arith.negf %430 : vector<8x32xf32>
    %432 = math.exp %431 : vector<8x32xf32>
    %cst_91 = arith.constant 1.000000e+00 : f32
    %433 = vector.broadcast %cst_91 : f32 to vector<8x32xf32>
    %434 = arith.addf %433, %432 : vector<8x32xf32>
    %435 = arith.divf %433, %434 : vector<8x32xf32>
    %436 = vector.extract_strided_slice %429 {offsets = [0, 32], sizes = [8, 32], strides = [1, 1]} : vector<8x128xf32> to vector<8x32xf32>
    %437 = arith.negf %436 : vector<8x32xf32>
    %438 = math.exp %437 : vector<8x32xf32>
    %cst_92 = arith.constant 1.000000e+00 : f32
    %439 = vector.broadcast %cst_92 : f32 to vector<8x32xf32>
    %440 = arith.addf %439, %438 : vector<8x32xf32>
    %441 = arith.divf %439, %440 : vector<8x32xf32>
    %442 = vector.extract_strided_slice %429 {offsets = [0, 64], sizes = [8, 32], strides = [1, 1]} : vector<8x128xf32> to vector<8x32xf32>
    %443 = math.tanh %442 : vector<8x32xf32>
    %444 = vector.extract_strided_slice %429 {offsets = [0, 96], sizes = [8, 32], strides = [1, 1]} : vector<8x128xf32> to vector<8x32xf32>
    %445 = arith.negf %444 : vector<8x32xf32>
    %446 = math.exp %445 : vector<8x32xf32>
    %cst_93 = arith.constant 1.000000e+00 : f32
    %447 = vector.broadcast %cst_93 : f32 to vector<8x32xf32>
    %448 = arith.addf %447, %446 : vector<8x32xf32>
    %449 = arith.divf %447, %448 : vector<8x32xf32>
    %450 = arith.mulf %441, %383 : vector<8x32xf32>
    %451 = arith.mulf %435, %443 : vector<8x32xf32>
    %452 = arith.addf %450, %451 : vector<8x32xf32>
    %453 = math.tanh %452 : vector<8x32xf32>
    %454 = arith.mulf %449, %453 : vector<8x32xf32>
    %455 = tpu.concatenate %454, %415 in 1 : vector<8x32xf32>, vector<8x32xf32> -> vector<8x64xf32>
    %456 = arith.truncf %455 : vector<8x64xf32> to vector<8x64xbf16>
    %cst_94 = arith.constant dense<0.000000e+00> : vector<8x128xf32>
    %457 = tpu.matmul %456, %3, %cst_94 {dimension_numbers = #tpu.dot_dimension_numbers<[1], [0], [0], [1], [0, 0, 1, 1], [], []>} : vector<8x64xbf16>, vector<64x128xbf16>, vector<8x128xf32> -> vector<8x128xf32>
    %458 = vector.broadcast %4 : vector<1x128xf32> to vector<8x128xf32>
    %459 = arith.addf %457, %458 : vector<8x128xf32>
    %460 = vector.extract_strided_slice %459 {offsets = [0, 0], sizes = [8, 32], strides = [1, 1]} : vector<8x128xf32> to vector<8x32xf32>
    %461 = arith.negf %460 : vector<8x32xf32>
    %462 = math.exp %461 : vector<8x32xf32>
    %cst_95 = arith.constant 1.000000e+00 : f32
    %463 = vector.broadcast %cst_95 : f32 to vector<8x32xf32>
    %464 = arith.addf %463, %462 : vector<8x32xf32>
    %465 = arith.divf %463, %464 : vector<8x32xf32>
    %466 = vector.extract_strided_slice %459 {offsets = [0, 32], sizes = [8, 32], strides = [1, 1]} : vector<8x128xf32> to vector<8x32xf32>
    %467 = arith.negf %466 : vector<8x32xf32>
    %468 = math.exp %467 : vector<8x32xf32>
    %cst_96 = arith.constant 1.000000e+00 : f32
    %469 = vector.broadcast %cst_96 : f32 to vector<8x32xf32>
    %470 = arith.addf %469, %468 : vector<8x32xf32>
    %471 = arith.divf %469, %470 : vector<8x32xf32>
    %472 = vector.extract_strided_slice %459 {offsets = [0, 64], sizes = [8, 32], strides = [1, 1]} : vector<8x128xf32> to vector<8x32xf32>
    %473 = math.tanh %472 : vector<8x32xf32>
    %474 = vector.extract_strided_slice %459 {offsets = [0, 96], sizes = [8, 32], strides = [1, 1]} : vector<8x128xf32> to vector<8x32xf32>
    %475 = arith.negf %474 : vector<8x32xf32>
    %476 = math.exp %475 : vector<8x32xf32>
    %cst_97 = arith.constant 1.000000e+00 : f32
    %477 = vector.broadcast %cst_97 : f32 to vector<8x32xf32>
    %478 = arith.addf %477, %476 : vector<8x32xf32>
    %479 = arith.divf %477, %478 : vector<8x32xf32>
    %480 = arith.mulf %471, %413 : vector<8x32xf32>
    %481 = arith.mulf %465, %473 : vector<8x32xf32>
    %482 = arith.addf %480, %481 : vector<8x32xf32>
    %483 = math.tanh %482 : vector<8x32xf32>
    %484 = arith.mulf %479, %483 : vector<8x32xf32>
    %485 = arith.index_cast %c6_i32 : i32 to index
    %c0_98 = arith.constant 0 : index
    %c0_99 = arith.constant 0 : index
    %486 = vector.load %arg6[%485, %c0_98, %c0_99] : memref<8x8x32xf32, #tpu.memory_space<vmem>>, vector<1x8x32xf32>
    %487 = vector.shape_cast %486 : vector<1x8x32xf32> to vector<8x32xf32>
    %488 = vector.shape_cast %484 : vector<8x32xf32> to vector<1x8x32xf32>
    tpu.vector_store %arg6[%485, %c0_98, %c0_99], %488 {strides = array<i32>} : memref<8x8x32xf32, #tpu.memory_space<vmem>>, vector<1x8x32xf32>,
    %c7_i32 = arith.constant 7 : i32
    %489 = arith.index_cast %c7_i32 : i32 to index
    %c0_100 = arith.constant 0 : index
    %c0_101 = arith.constant 0 : index
    %490 = vector.load %arg0[%489, %c0_100, %c0_101] : memref<8x8x128xf32, #tpu.memory_space<vmem>>, vector<1x8x128xf32>
    %491 = vector.shape_cast %490 : vector<1x8x128xf32> to vector<8x128xf32>
    %492 = arith.truncf %491 : vector<8x128xf32> to vector<8x128xbf16>
    %cst_102 = arith.constant dense<0.000000e+00> : vector<8x16xf32>
    %493 = tpu.matmul %492, %0, %cst_102 {dimension_numbers = #tpu.dot_dimension_numbers<[1], [0], [0], [1], [0, 0, 1, 1], [], []>} : vector<8x128xbf16>, vector<128x16xbf16>, vector<8x16xf32> -> vector<8x16xf32>
    %494 = tpu.concatenate %493, %454 in 1 : vector<8x16xf32>, vector<8x32xf32> -> vector<8x48xf32>
    %495 = arith.truncf %494 : vector<8x48xf32> to vector<8x48xbf16>
    %cst_103 = arith.constant dense<0.000000e+00> : vector<8x128xf32>
    %496 = tpu.matmul %495, %1, %cst_103 {dimension_numbers = #tpu.dot_dimension_numbers<[1], [0], [0], [1], [0, 0, 1, 1], [], []>} : vector<8x48xbf16>, vector<48x128xbf16>, vector<8x128xf32> -> vector<8x128xf32>
    %497 = vector.broadcast %2 : vector<1x128xf32> to vector<8x128xf32>
    %498 = arith.addf %496, %497 : vector<8x128xf32>
    %499 = vector.extract_strided_slice %498 {offsets = [0, 0], sizes = [8, 32], strides = [1, 1]} : vector<8x128xf32> to vector<8x32xf32>
    %500 = arith.negf %499 : vector<8x32xf32>
    %501 = math.exp %500 : vector<8x32xf32>
    %cst_104 = arith.constant 1.000000e+00 : f32
    %502 = vector.broadcast %cst_104 : f32 to vector<8x32xf32>
    %503 = arith.addf %502, %501 : vector<8x32xf32>
    %504 = arith.divf %502, %503 : vector<8x32xf32>
    %505 = vector.extract_strided_slice %498 {offsets = [0, 32], sizes = [8, 32], strides = [1, 1]} : vector<8x128xf32> to vector<8x32xf32>
    %506 = arith.negf %505 : vector<8x32xf32>
    %507 = math.exp %506 : vector<8x32xf32>
    %cst_105 = arith.constant 1.000000e+00 : f32
    %508 = vector.broadcast %cst_105 : f32 to vector<8x32xf32>
    %509 = arith.addf %508, %507 : vector<8x32xf32>
    %510 = arith.divf %508, %509 : vector<8x32xf32>
    %511 = vector.extract_strided_slice %498 {offsets = [0, 64], sizes = [8, 32], strides = [1, 1]} : vector<8x128xf32> to vector<8x32xf32>
    %512 = math.tanh %511 : vector<8x32xf32>
    %513 = vector.extract_strided_slice %498 {offsets = [0, 96], sizes = [8, 32], strides = [1, 1]} : vector<8x128xf32> to vector<8x32xf32>
    %514 = arith.negf %513 : vector<8x32xf32>
    %515 = math.exp %514 : vector<8x32xf32>
    %cst_106 = arith.constant 1.000000e+00 : f32
    %516 = vector.broadcast %cst_106 : f32 to vector<8x32xf32>
    %517 = arith.addf %516, %515 : vector<8x32xf32>
    %518 = arith.divf %516, %517 : vector<8x32xf32>
    %519 = arith.mulf %510, %452 : vector<8x32xf32>
    %520 = arith.mulf %504, %512 : vector<8x32xf32>
    %521 = arith.addf %519, %520 : vector<8x32xf32>
    %522 = math.tanh %521 : vector<8x32xf32>
    %523 = arith.mulf %518, %522 : vector<8x32xf32>
    %524 = tpu.concatenate %523, %484 in 1 : vector<8x32xf32>, vector<8x32xf32> -> vector<8x64xf32>
    %525 = arith.truncf %524 : vector<8x64xf32> to vector<8x64xbf16>
    %cst_107 = arith.constant dense<0.000000e+00> : vector<8x128xf32>
    %526 = tpu.matmul %525, %3, %cst_107 {dimension_numbers = #tpu.dot_dimension_numbers<[1], [0], [0], [1], [0, 0, 1, 1], [], []>} : vector<8x64xbf16>, vector<64x128xbf16>, vector<8x128xf32> -> vector<8x128xf32>
    %527 = vector.broadcast %4 : vector<1x128xf32> to vector<8x128xf32>
    %528 = arith.addf %526, %527 : vector<8x128xf32>
    %529 = vector.extract_strided_slice %528 {offsets = [0, 0], sizes = [8, 32], strides = [1, 1]} : vector<8x128xf32> to vector<8x32xf32>
    %530 = arith.negf %529 : vector<8x32xf32>
    %531 = math.exp %530 : vector<8x32xf32>
    %cst_108 = arith.constant 1.000000e+00 : f32
    %532 = vector.broadcast %cst_108 : f32 to vector<8x32xf32>
    %533 = arith.addf %532, %531 : vector<8x32xf32>
    %534 = arith.divf %532, %533 : vector<8x32xf32>
    %535 = vector.extract_strided_slice %528 {offsets = [0, 32], sizes = [8, 32], strides = [1, 1]} : vector<8x128xf32> to vector<8x32xf32>
    %536 = arith.negf %535 : vector<8x32xf32>
    %537 = math.exp %536 : vector<8x32xf32>
    %cst_109 = arith.constant 1.000000e+00 : f32
    %538 = vector.broadcast %cst_109 : f32 to vector<8x32xf32>
    %539 = arith.addf %538, %537 : vector<8x32xf32>
    %540 = arith.divf %538, %539 : vector<8x32xf32>
    %541 = vector.extract_strided_slice %528 {offsets = [0, 64], sizes = [8, 32], strides = [1, 1]} : vector<8x128xf32> to vector<8x32xf32>
    %542 = math.tanh %541 : vector<8x32xf32>
    %543 = vector.extract_strided_slice %528 {offsets = [0, 96], sizes = [8, 32], strides = [1, 1]} : vector<8x128xf32> to vector<8x32xf32>
    %544 = arith.negf %543 : vector<8x32xf32>
    %545 = math.exp %544 : vector<8x32xf32>
    %cst_110 = arith.constant 1.000000e+00 : f32
    %546 = vector.broadcast %cst_110 : f32 to vector<8x32xf32>
    %547 = arith.addf %546, %545 : vector<8x32xf32>
    %548 = arith.divf %546, %547 : vector<8x32xf32>
    %549 = arith.mulf %540, %482 : vector<8x32xf32>
    %550 = arith.mulf %534, %542 : vector<8x32xf32>
    %551 = arith.addf %549, %550 : vector<8x32xf32>
    %552 = math.tanh %551 : vector<8x32xf32>
    %553 = arith.mulf %548, %552 : vector<8x32xf32>
    %554 = arith.index_cast %c7_i32 : i32 to index
    %c0_111 = arith.constant 0 : index
    %c0_112 = arith.constant 0 : index
    %555 = vector.load %arg6[%554, %c0_111, %c0_112] : memref<8x8x32xf32, #tpu.memory_space<vmem>>, vector<1x8x32xf32>
    %556 = vector.shape_cast %555 : vector<1x8x32xf32> to vector<8x32xf32>
    %557 = vector.shape_cast %553 : vector<8x32xf32> to vector<1x8x32xf32>
    tpu.vector_store %arg6[%554, %c0_111, %c0_112], %557 {strides = array<i32>} : memref<8x8x32xf32, #tpu.memory_space<vmem>>, vector<1x8x32xf32>,
    %c8_i32 = arith.constant 8 : i32
    %c0_113 = arith.constant 0 : index
    %c0_114 = arith.constant 0 : index
    %c0_115 = arith.constant 0 : index
    %558 = vector.load %arg7[%c0_113, %c0_114, %c0_115] : memref<2x8x32xf32, #tpu.memory_space<vmem>>, vector<1x8x32xf32>
    %559 = vector.shape_cast %558 : vector<1x8x32xf32> to vector<8x32xf32>
    %560 = vector.shape_cast %523 : vector<8x32xf32> to vector<1x8x32xf32>
    tpu.vector_store %arg7[%c0_113, %c0_114, %c0_115], %560 {strides = array<i32>} : memref<2x8x32xf32, #tpu.memory_space<vmem>>, vector<1x8x32xf32>,
    %c1 = arith.constant 1 : index
    %c0_116 = arith.constant 0 : index
    %c0_117 = arith.constant 0 : index
    %561 = vector.load %arg7[%c1, %c0_116, %c0_117] : memref<2x8x32xf32, #tpu.memory_space<vmem>>, vector<1x8x32xf32>
    %562 = vector.shape_cast %561 : vector<1x8x32xf32> to vector<8x32xf32>
    %563 = vector.shape_cast %553 : vector<8x32xf32> to vector<1x8x32xf32>
    tpu.vector_store %arg7[%c1, %c0_116, %c0_117], %563 {strides = array<i32>} : memref<2x8x32xf32, #tpu.memory_space<vmem>>, vector<1x8x32xf32>,
    %c0_118 = arith.constant 0 : index
    %c0_119 = arith.constant 0 : index
    %c0_120 = arith.constant 0 : index
    %564 = vector.load %arg8[%c0_118, %c0_119, %c0_120] : memref<2x8x32xf32, #tpu.memory_space<vmem>>, vector<1x8x32xf32>
    %565 = vector.shape_cast %564 : vector<1x8x32xf32> to vector<8x32xf32>
    %566 = vector.shape_cast %521 : vector<8x32xf32> to vector<1x8x32xf32>
    tpu.vector_store %arg8[%c0_118, %c0_119, %c0_120], %566 {strides = array<i32>} : memref<2x8x32xf32, #tpu.memory_space<vmem>>, vector<1x8x32xf32>,
    %c1_121 = arith.constant 1 : index
    %c0_122 = arith.constant 0 : index
    %c0_123 = arith.constant 0 : index
    %567 = vector.load %arg8[%c1_121, %c0_122, %c0_123] : memref<2x8x32xf32, #tpu.memory_space<vmem>>, vector<1x8x32xf32>
    %568 = vector.shape_cast %567 : vector<1x8x32xf32> to vector<8x32xf32>
    %569 = vector.shape_cast %551 : vector<8x32xf32> to vector<1x8x32xf32>
    tpu.vector_store %arg8[%c1_121, %c0_122, %c0_123], %569 {strides = array<i32>} : memref<2x8x32xf32, #tpu.memory_space<vmem>>, vector<1x8x32xf32>,
    return
  }
}

</mosaic_0001>

<bundles_post_ra>
// kernel: encoder_forward_pallas.1
= control target key start
LH: loop header
LB: loop body
LE: loop exit
PB: predicated region body
PF: predicated region fallthrough
CT: control target
= control target key end

     0   :  { %14 = vsyncpa [#allocation3], 0  ;;  %v2573_v1 = vmov 0.0   ;;  %vm2574_vm0 = vmmov 0   ;;  %s3381_s0 = inlined_call_operand.vmem [shape: f32[8,8,128], index: 0, kind: input, shape index: {}]   ;;  %s3382_s1 = inlined_call_operand.vmem [shape: bf16[128,16], index: 1, kind: input, shape index: {}]   ;;  %s3383_s2 = inlined_call_operand.vmem [shape: bf16[48,128], index: 2, kind: input, shape index: {}]   ;;  %s3384_s3 = inlined_call_operand.vmem [shape: f32[1,128], index: 3, kind: input, shape index: {}]   ;;  %s3385_s4 = inlined_call_operand.vmem [shape: bf16[64,128], index: 4, kind: input, shape index: {}]   ;;  %s3386_s5 = inlined_call_operand.vmem [shape: f32[1,128], index: 5, kind: input, shape index: {}]   ;;  %s3387_s6 = inlined_call_operand.hbm [shape: f32[8,8,32], index: 6, kind: output, shape index: {0}]   ;;  %s3388_s7 = inlined_call_operand.hbm [shape: f32[2,8,32], index: 7, kind: output, shape index: {1}]   ;;  %s3389_s8 = inlined_call_operand.hbm [shape: f32[2,8,32], index: 8, kind: output, shape index: {2}]  }
   0x1   :  { %v2632_v0 = vld [vmem:[%s3382_s1] sm:$0xff]   ;;  %1996 = vmatprep.subr.bf16.mxu0 %v2573_v1  ;;  %2016 = vmatprep.subr.bf16.mxu1 %v2573_v1  ;;  %v2640_v2 = vld [vmem:[%s3382_s1 + $0x8] sm:$0xff]   ;;  %v2651_v3 = vld [vmem:[%s3382_s1 + $0x10] sm:$0xff]  }
   0x2   :  { %1997 = vmatpush3.bf16.msra.mxu0 %v2632_v0  ;;  %2012 = vmatprep.mubr.msk.bf16.mxu0 %vm2574_vm0, %v2573_v1  ;;  %v2657_v4 = vld [vmem:[%s3382_s1 + $0x18] sm:$0xff]   ;;  %v2662_v5 = vld [vmem:[%s3383_s2] sm:$0xff]   ;;  %v2668_v6 = vld [vmem:[%s3383_s2 + $0x8] sm:$0xff]  }
   0x3   :  { %1998 = vmatprep.subr.bf16.mxu0 %v2573_v1  ;;  %2022 = vmatprep.mubr.msk.bf16.mxu1 %vm2574_vm0, %v2573_v1 }
   0x4   :  { %2017 = vmatpush3.bf16.msra.mxu1 %v2662_v5 }
   0x5   :  { %2018 = vmatprep.subr.bf16.mxu1 %v2573_v1 }
   0x6   :  { %1999 = vmatpush3.bf16.msra.mxu0 %v2640_v2 }
   0x7   :  { %2000 = vmatprep.subr.bf16.mxu0 %v2573_v1 }
   0xa   :  { %2001 = vmatpush3.bf16.msra.mxu0 %v2651_v3 }
   0xb   :  { %2002 = vmatprep.subr.bf16.mxu0 %v2573_v1 }
   0xc   :  { %15 = vsyncpa [#allocation5], 0  ;;  %v2677_v7 = vld [vmem:[%s3382_s1 + $0x20] sm:$0xff]   ;;  %2019 = vmatpush3.bf16.msra.mxu1 %v2668_v6  ;;  %v2686_v8 = vld [vmem:[%s3382_s1 + $0x28] sm:$0xff]   ;;  %vm151_vm1 = vcmask 130048   ;;  %vm178_vm2 = vcmask 392192  }
   0xd   :  { %2020 = vmatprep.subr.bf16.mxu1 %v2573_v1  ;;  %v2693_v9 = vld [vmem:[%s3382_s1 + $0x30] sm:$0xff]   ;;  %v2700_v10 = vld [vmem:[%s3382_s1 + $0x38] sm:$0xff]   ;;  %v61_v11 = vld [vmem:[%s3381_s0] sm:$0xff]  ;;  %s2575_s9 = smov 64   ;;  %s2576_s10 = smov 32   ;;  %vm250_vm3 = vcmask 261120  }
   0xe   :  { %2003 = vmatpush3.bf16.msra.mxu0 %v2657_v4  ;;  %v62_v12 = vpack.c.bf16 %v61_v11, %v61_v11  ;;  %v2717_v13 = vld [vmem:[%s3383_s2 + $0x10] sm:$0xff]   ;;  %v2730_v20 = vld [vmem:[%s3384_s3] ss:$0 sm:$0xff]  ;;  %v2747_v37 = vld [vmem:[%s3385_s4 + $0x8] sm:$0xff]   ;;  %s2577_s19 = smov 48   ;;  %vm283_vm4 = vcmask 523264  }
   0xf   :  { %2004 = vmatprep.subr.bf16.mxu0 %v2573_v1  ;;  %v2741_v36 = vld [vmem:[%s3385_s4] sm:$0xff]   ;;  %v2754_v38 = vld [vmem:[%s3385_s4 + $0x10] sm:$0xff]   ;;  %v2761_v40 = vld [vmem:[%s3385_s4 + $0x18] sm:$0xff]   ;;  %s2581_s27 = smov [#allocation6]  }
  0x10   :  { %2021 = vmatpush3.bf16.msra.mxu1 %v2717_v13  ;;  %v1817_v46 = vld [vmem:[%s3381_s0 + $0x8] sm:$0xff]  ;;  %v2803_v48 = vld [vmem:[%s3386_s5] ss:$0 sm:$0xff]  ;;  %s1778_s28 = sshll.u32 %s2581_s27, 4  ;;  %s3323_s28 = int_to_ptr.vmem [resolvable:$true] %s1778_s28 }
  0x11   :  { %2026 = vmatprep.subr.bf16.mxu1 %v2573_v1  ;;  %v358_v47 = vpack.c.bf16 %v1817_v46, %v1817_v46 }
  0x12   :  { %2005 = vmatpush3.bf16.msra.mxu0 %v2677_v7 }
  0x13   :  { %2006 = vmatprep.subr.bf16.mxu0 %v2573_v1 }
  0x16   :  { %2007 = vmatpush3.bf16.msra.mxu0 %v2686_v8 }
  0x17   :  { %2008 = vmatprep.subr.bf16.mxu0 %v2573_v1 }
  0x1a   :  { %2009 = vmatpush3.bf16.msra.mxu0 %v2693_v9 }
  0x1b   :  { %2010 = vmatprep.subr.bf16.mxu0 %v2573_v1 }
  0x1e   :  { %2011 = vmatpush3.bf16.msra.mxu0 %v2700_v10 }
  0x1f   :  { %2058 = vmatprep.subr.bf16.mxu0 %v2573_v1 }
  0x21   :  { %2013 = vmatmul.mubr.bf16.vlgmr.msra.gmra.mrb[0].mxu0 %v62_v12 }
  0x22   :  { %2059 = vmatpush3.bf16.msra.mxu0 %v2662_v5  ;;  %2064 = vmatprep.mubr.msk.bf16.mxu0 %vm2574_vm0, %v2573_v1 }
  0x23   :  { %2060 = vmatprep.subr.bf16.mxu0 %v2573_v1 }
  0x26   :  { %2061 = vmatpush3.bf16.msra.mxu0 %v2668_v6 }
  0x27   :  { %2062 = vmatprep.subr.bf16.mxu0 %v2573_v1 }
  0x2a   :  { %2063 = vmatpush3.bf16.msra.mxu0 %v2717_v13 }
  0x2b   :  { %2068 = vmatprep.subr.bf16.mxu0 %v2573_v1 }
  0xf4   :  { %v145_v14 = vpop.f32.mrb[0].mxu0 }
  0xf5   :  { %v152_v15 = vsel %vm151_vm1, %v145_v14, 0.0  ;;  %v2014_v16 = vpop.f32.mrb[1].mxu0 }
  0xf6   :  { %v153_v17 = vpack.c.bf16 %v152_v15, %v152_v15  ;;  %v148_v18 = vpop.f32.mrb[2].mxu0 }
  0xf7   :  { %v2015_v19 = vpop.f32.mrb[3].mxu0 }
  0xf8   :  { %2023 = vmatmul.mubr.msk.bf16.vlgmr.msra.gmra.mrb[0].mxu1 %vm178_vm2, %v153_v17 }
  0xf9   :  { %2034 = vmatprep.mubr.msk.bf16.mxu1 %vm2574_vm0, %v2573_v1  ;;  %2027 = vmatpush3.bf16.msra.mxu1 %v2741_v36 }
  0xfa   :  { %2028 = vmatprep.subr.bf16.mxu1 %v2573_v1 }
  0xfd   :  { %2029 = vmatpush3.bf16.msra.mxu1 %v2747_v37 }
  0xfe   :  { %2030 = vmatprep.subr.bf16.mxu1 %v2573_v1 }
 0x101   :  { %2031 = vmatpush3.bf16.msra.mxu1 %v2754_v38 }
 0x102   :  { %2032 = vmatprep.subr.bf16.mxu1 %v2573_v1 }
 0x105   :  { %2033 = vmatpush3.bf16.msra.mxu1 %v2761_v40 }
 0x106   :  { %2038 = vmatprep.subr.bf16.mxu1 %v2573_v1 }
 0x1cb   :  { %v216_v21 = vpop.f32.mrb[0].mxu1 }
 0x1cc   :  { %v217_v22 = vadd.f32 %v2730_v20, %v216_v21  ;;  %v2024_v23 = vpop.f32.mrb[1].mxu1 }
 0x1cd   :  { %v219_v24 = vpop.f32.mrb[2].mxu1 }
 0x1ce   :  { %2358 = vtanh.f32 %v217_v22  ;;  %v2025_v25 = vpop.f32.mrb[3].mxu1  ;;  %v1809_v27 = vmul.f32 -1.442695, %v217_v22 }
 0x1d0   :  { %2360 = vpow2.f32 %v1809_v27 }
 0x1d8   :  { %v2359_v26 = vpop.eup %2358 }
 0x1d9   :  { %231 = vrot.lane.b32.xlu0 %v2359_v26, %s2575_s9 }
 0x1da   :  { %v2361_v28 = vpop.eup %2360 }
 0x1db   :  { %v225_v29 = vadd.f32 1.0, %v2361_v28 }
 0x1dd   :  { %2362 = vrcp.f32 %v225_v29 }
 0x1e7   :  { %v2363_v30 = vpop.eup %2362 }
 0x1e8   :  { %v229_v33 = vmul.f32 0.0, %v2363_v30 }
 0x24b   :  { %v232_v31 = vpop.permute.xlu0 %231 }
 0x24c   :  { %v234_v32 = vmul.f32 %v2363_v30, %v232_v31 }
 0x24e   :  { %236 = vrot.lane.b32.xlu0 %v234_v32, %s2576_s10 }
 0x2c0   :  { %v237_v34 = vpop.permute.xlu0 %236 }
 0x2c1   :  { %v2735_v35 = vadd.f32 %v237_v34, %v229_v33 }
 0x2c3   :  { %2364 = vtanh.f32 %v2735_v35 }
 0x2cd   :  { %v2365_v39 = vpop.eup %2364 }
 0x2ce   :  { %242 = vrot.lane.b32.xlu1 %v2365_v39, %s2575_s9 }
 0x340   :  { %v243_v41 = vpop.permute.xlu1 %242 }
 0x341   :  { %v245_v42 = vmul.f32 %v2363_v30, %v243_v41 }
 0x343   :  { %399 = vrot.lane.b32.xlu0 %v245_v42, %s2577_s19  ;;  %247 = vrot.lane.b32.xlu1 %v245_v42, %s2576_s10 }
 0x3b5   :  { %v248_v43 = vpop.permute.xlu1 %247  ;;  %v400_v55 = vpop.permute.xlu0 %399 }
 0x3b6   :  { %v251_v44 = vsel %vm250_vm3, %v248_v43, 0.0 }
 0x3b7   :  { %v252_v45 = vpack.c.bf16 %v251_v44, %v251_v44 }
 0x3b9   :  { %2035 = vmatmul.mubr.msk.bf16.vlgmr.msra.gmra.mrb[4].mxu1 %vm283_vm4, %v252_v45 }
 0x3ba   :  { %2039 = vmatpush3.bf16.msra.mxu1 %v2632_v0  ;;  %2054 = vmatprep.mubr.msk.bf16.mxu1 %vm2574_vm0, %v2573_v1 }
 0x3bb   :  { %2040 = vmatprep.subr.bf16.mxu1 %v2573_v1 }
 0x3be   :  { %2041 = vmatpush3.bf16.msra.mxu1 %v2640_v2 }
 0x3bf   :  { %2042 = vmatprep.subr.bf16.mxu1 %v2573_v1 }
 0x3c2   :  { %2043 = vmatpush3.bf16.msra.mxu1 %v2651_v3 }
 0x3c3   :  { %2044 = vmatprep.subr.bf16.mxu1 %v2573_v1 }
 0x3c6   :  { %2045 = vmatpush3.bf16.msra.mxu1 %v2657_v4 }
 0x3c7   :  { %2046 = vmatprep.subr.bf16.mxu1 %v2573_v1 }
 0x3ca   :  { %2047 = vmatpush3.bf16.msra.mxu1 %v2677_v7 }
 0x3cb   :  { %2048 = vmatprep.subr.bf16.mxu1 %v2573_v1 }
 0x3ce   :  { %2049 = vmatpush3.bf16.msra.mxu1 %v2686_v8 }
 0x3cf   :  { %2050 = vmatprep.subr.bf16.mxu1 %v2573_v1 }
 0x3d2   :  { %2051 = vmatpush3.bf16.msra.mxu1 %v2693_v9 }
 0x3d3   :  { %2052 = vmatprep.subr.bf16.mxu1 %v2573_v1 }
 0x3d6   :  { %2053 = vmatpush3.bf16.msra.mxu1 %v2700_v10 }
 0x3d7   :  { %2100 = vmatprep.subr.bf16.mxu1 %v2573_v1 }
 0x3d9   :  { %2055 = vmatmul.mubr.bf16.vlgmr.msra.gmra.mrb[8].mxu1 %v358_v47 }
 0x3da   :  { %2101 = vmatpush3.bf16.msra.mxu1 %v2662_v5  ;;  %2106 = vmatprep.mubr.msk.bf16.mxu1 %vm2574_vm0, %v2573_v1 }
 0x3db   :  { %2102 = vmatprep.subr.bf16.mxu1 %v2573_v1 }
 0x3de   :  { %2103 = vmatpush3.bf16.msra.mxu1 %v2668_v6 }
 0x3df   :  { %2104 = vmatprep.subr.bf16.mxu1 %v2573_v1 }
 0x3e2   :  { %2105 = vmatpush3.bf16.msra.mxu1 %v2717_v13 }
 0x3e3   :  { %2110 = vmatprep.subr.bf16.mxu1 %v2573_v1 }
 0x48c   :  { %v321_v49 = vpop.f32.mrb[4].mxu1 }
 0x48d   :  { %v322_v50 = vadd.f32 %v2803_v48, %v321_v49  ;;  %v2036_v51 = vpop.f32.mrb[5].mxu1 }
 0x48e   :  { %v324_v52 = vpop.f32.mrb[6].mxu1 }
 0x48f   :  { %2366 = vtanh.f32 %v322_v50  ;;  %v2037_v53 = vpop.f32.mrb[7].mxu1  ;;  %v1816_v62 = vmul.f32 -1.442695, %v322_v50  ;;  %v1822_v50 = vld [vmem:[%s3381_s0 + $0x10] sm:$0xff] }
 0x490   :  { %v555_v51 = vpack.c.bf16 %v1822_v50, %v1822_v50 }
 0x491   :  { %2368 = vpow2.f32 %v1816_v62 }
 0x499   :  { %v2367_v54 = vpop.eup %2366 }
 0x49a   :  { %336 = vrot.lane.b32.xlu1 %v2367_v54, %s2575_s9 }
 0x49b   :  { %v2369_v63 = vpop.eup %2368 }
 0x49c   :  { %v330_v11 = vadd.f32 1.0, %v2369_v63 }
 0x49e   :  { %2370 = vrcp.f32 %v330_v11 }
 0x4a8   :  { %v2371_v12 = vpop.eup %2370 }
 0x4a9   :  { %v334_v16 = vmul.f32 0.0, %v2371_v12 }
 0x4ac   :  { %v393_v56 = vpop.f32.mrb[8].mxu1 }
 0x4ad   :  { %v402_v57 = vsel %vm151_vm1, %v393_v56, %v400_v55  ;;  %v2056_v58 = vpop.f32.mrb[9].mxu1 }
 0x4ae   :  { %v403_v59 = vpack.c.bf16 %v402_v57, %v402_v57  ;;  %v396_v60 = vpop.f32.mrb[10].mxu1 }
 0x4af   :  { %v2057_v61 = vpop.f32.mrb[11].mxu1 }
 0x4b0   :  { %2065 = vmatmul.mubr.msk.bf16.vlgmr.msra.gmra.mrb[4].mxu0 %vm178_vm2, %v403_v59 }
 0x4b1   :  { %2069 = vmatpush3.bf16.msra.mxu0 %v2741_v36  ;;  %2076 = vmatprep.mubr.msk.bf16.mxu0 %vm2574_vm0, %v2573_v1 }
 0x4b2   :  { %2070 = vmatprep.subr.bf16.mxu0 %v2573_v1 }
 0x4b5   :  { %2071 = vmatpush3.bf16.msra.mxu0 %v2747_v37 }
 0x4b6   :  { %2072 = vmatprep.subr.bf16.mxu0 %v2573_v1 }
 0x4b9   :  { %2073 = vmatpush3.bf16.msra.mxu0 %v2754_v38 }
 0x4ba   :  { %2074 = vmatprep.subr.bf16.mxu0 %v2573_v1 }
 0x4bd   :  { %2075 = vmatpush3.bf16.msra.mxu0 %v2761_v40 }
 0x4be   :  { %2080 = vmatprep.subr.bf16.mxu0 %v2573_v1 }
 0x50c   :  { %v337_v14 = vpop.permute.xlu1 %336 }
 0x50d   :  { %v339_v15 = vmul.f32 %v2371_v12, %v337_v14 }
 0x50f   :  { %341 = vrot.lane.b32.xlu1 %v339_v15, %s2576_s10 }
 0x581   :  { %v342_v17 = vpop.permute.xlu1 %341 }
 0x582   :  { %v2820_v18 = vadd.f32 %v342_v17, %v334_v16 }
 0x583   :  { %v441_v19 = vpop.f32.mrb[4].mxu0 }
 0x584   :  { %2372 = vtanh.f32 %v2820_v18  ;;  %v442_v21 = vadd.f32 %v2730_v20, %v441_v19  ;;  %v2066_v22 = vpop.f32.mrb[5].mxu0 }
 0x585   :  { %v444_v23 = vpop.f32.mrb[6].mxu0 }
 0x586   :  { %2374 = vtanh.f32 %v442_v21  ;;  %v2067_v24 = vpop.f32.mrb[7].mxu0  ;;  %v1819_v27 = vmul.f32 -1.442695, %v442_v21 }
 0x588   :  { %2376 = vpow2.f32 %v1819_v27 }
 0x58e   :  { %v2373_v25 = vpop.eup %2372 }
 0x58f   :  { %347 = vrot.lane.b32.xlu1 %v2373_v25, %s2575_s9 }
 0x590   :  { %v2375_v26 = vpop.eup %2374 }
 0x591   :  { %456 = vrot.lane.b32.xlu0 %v2375_v26, %s2575_s9 }
 0x592   :  { %v2377_v28 = vpop.eup %2376 }
 0x593   :  { %v450_v29 = vadd.f32 1.0, %v2377_v28 }
 0x595   :  { %2378 = vrcp.f32 %v450_v29 }
 0x59f   :  { %v2379_v30 = vpop.eup %2378 }
 0x5a0   :  { %v454_v33 = vmul.f32 %v2379_v30, %v2735_v35 }
 0x601   :  { %v348_v42 = vpop.permute.xlu1 %347 }
 0x602   :  { %v2832_v43 = vmul.f32 %v2371_v12, %v348_v42 }
 0x603   :  { %v457_v31 = vpop.permute.xlu0 %456 }
 0x604   :  { %v459_v32 = vmul.f32 %v2379_v30, %v457_v31 }
 0x606   :  { %461 = vrot.lane.b32.xlu0 %v459_v32, %s2576_s10 }
 0x678   :  { %v462_v34 = vpop.permute.xlu0 %461 }
 0x679   :  { %v2828_v39 = vadd.f32 %v462_v34, %v454_v33 }
 0x67b   :  { %2380 = vtanh.f32 %v2828_v39 }
 0x685   :  { %v2381_v41 = vpop.eup %2380 }
 0x686   :  { %467 = vrot.lane.b32.xlu0 %v2381_v41, %s2575_s9 }
 0x68a   :  { %475 = vrot.lane.b32.xlu0 %v2832_v43, %s2575_s9 }
 0x6f8   :  { %v468_v44 = vpop.permute.xlu0 %467 }
 0x6f9   :  { %v470_v45 = vmul.f32 %v2379_v30, %v468_v44 }
 0x6fb   :  { %472 = vrot.lane.b32.xlu1 %v470_v45, %s2576_s10 }
 0x6fc   :  { %v476_v35 = vpop.permute.xlu0 %475 }
 0x6ff   :  { %596 = vrot.lane.b32.xlu1 %v470_v45, %s2577_s19 }
 0x76d   :  { %v473_v46 = vpop.permute.xlu1 %472 }
 0x76e   :  { %v478_v47 = vsel %vm250_vm3, %v473_v46, %v476_v35 }
 0x76f   :  { %v479_v49 = vpack.c.bf16 %v478_v47, %v478_v47 }
 0x771   :  { %2077 = vmatmul.mubr.msk.bf16.vlgmr.msra.gmra.mrb[8].mxu0 %vm283_vm4, %v479_v49  ;;  %v597_v58 = vpop.permute.xlu1 %596 }
 0x772   :  { %2081 = vmatpush3.bf16.msra.mxu0 %v2632_v0  ;;  %2096 = vmatprep.mubr.msk.bf16.mxu0 %vm2574_vm0, %v2573_v1 }
 0x773   :  { %2082 = vmatprep.subr.bf16.mxu0 %v2573_v1 }
 0x776   :  { %2083 = vmatpush3.bf16.msra.mxu0 %v2640_v2 }
 0x777   :  { %2084 = vmatprep.subr.bf16.mxu0 %v2573_v1 }
 0x77a   :  { %2085 = vmatpush3.bf16.msra.mxu0 %v2651_v3 }
 0x77b   :  { %2086 = vmatprep.subr.bf16.mxu0 %v2573_v1 }
 0x77e   :  { %2087 = vmatpush3.bf16.msra.mxu0 %v2657_v4 }
 0x77f   :  { %2088 = vmatprep.subr.bf16.mxu0 %v2573_v1 }
 0x782   :  { %2089 = vmatpush3.bf16.msra.mxu0 %v2677_v7 }
 0x783   :  { %2090 = vmatprep.subr.bf16.mxu0 %v2573_v1 }
 0x786   :  { %2091 = vmatpush3.bf16.msra.mxu0 %v2686_v8 }
 0x787   :  { %2092 = vmatprep.subr.bf16.mxu0 %v2573_v1 }
 0x78a   :  { %2093 = vmatpush3.bf16.msra.mxu0 %v2693_v9 }
 0x78b   :  { %2094 = vmatprep.subr.bf16.mxu0 %v2573_v1 }
 0x78e   :  { %2095 = vmatpush3.bf16.msra.mxu0 %v2700_v10 }
 0x78f   :  { %2142 = vmatprep.subr.bf16.mxu0 %v2573_v1 }
 0x791   :  { %2097 = vmatmul.mubr.bf16.vlgmr.msra.gmra.mrb[12].mxu0 %v555_v51 }
 0x792   :  { %2143 = vmatpush3.bf16.msra.mxu0 %v2662_v5  ;;  %2148 = vmatprep.mubr.msk.bf16.mxu0 %vm2574_vm0, %v2573_v1 }
 0x793   :  { %2144 = vmatprep.subr.bf16.mxu0 %v2573_v1 }
 0x796   :  { %2145 = vmatpush3.bf16.msra.mxu0 %v2668_v6 }
 0x797   :  { %2146 = vmatprep.subr.bf16.mxu0 %v2573_v1 }
 0x79a   :  { %2147 = vmatpush3.bf16.msra.mxu0 %v2717_v13 }
 0x79b   :  { %2152 = vmatprep.subr.bf16.mxu0 %v2573_v1 }
 0x844   :  { %v517_v52 = vpop.f32.mrb[8].mxu0 }
 0x845   :  { %v518_v53 = vadd.f32 %v2803_v48, %v517_v52  ;;  %v2078_v54 = vpop.f32.mrb[9].mxu0 }
 0x846   :  { %v520_v55 = vpop.f32.mrb[10].mxu0  ;;  %v1827_v54 = vld [vmem:[%s3381_s0 + $0x18] sm:$0xff] }
 0x847   :  { %2382 = vtanh.f32 %v518_v53  ;;  %v2079_v56 = vpop.f32.mrb[11].mxu0  ;;  %v1821_v12 = vmul.f32 -1.442695, %v518_v53  ;;  %v752_v55 = vpack.c.bf16 %v1827_v54, %v1827_v54 }
 0x849   :  { %2384 = vpow2.f32 %v1821_v12 }
 0x851   :  { %v2383_v57 = vpop.eup %2382 }
 0x852   :  { %532 = vrot.lane.b32.xlu0 %v2383_v57, %s2575_s9 }
 0x853   :  { %v2385_v14 = vpop.eup %2384 }
 0x854   :  { %v526_v15 = vadd.f32 1.0, %v2385_v14 }
 0x856   :  { %2386 = vrcp.f32 %v526_v15 }
 0x860   :  { %v2387_v16 = vpop.eup %2386 }
 0x861   :  { %v530_v21 = vmul.f32 %v2387_v16, %v2820_v18 }
 0x864   :  { %v590_v59 = vpop.f32.mrb[12].mxu0 }
 0x865   :  { %v599_v60 = vsel %vm151_vm1, %v590_v59, %v597_v58  ;;  %v2098_v61 = vpop.f32.mrb[13].mxu0 }
 0x866   :  { %v600_v62 = vpack.c.bf16 %v599_v60, %v599_v60  ;;  %v593_v63 = vpop.f32.mrb[14].mxu0 }
 0x867   :  { %v2099_v11 = vpop.f32.mrb[15].mxu0 }
 0x868   :  { %2107 = vmatmul.mubr.msk.bf16.vlgmr.msra.gmra.mrb[12].mxu1 %vm178_vm2, %v600_v62 }
 0x869   :  { %2111 = vmatpush3.bf16.msra.mxu1 %v2741_v36  ;;  %2118 = vmatprep.mubr.msk.bf16.mxu1 %vm2574_vm0, %v2573_v1 }
 0x86a   :  { %2112 = vmatprep.subr.bf16.mxu1 %v2573_v1 }
 0x86d   :  { %2113 = vmatpush3.bf16.msra.mxu1 %v2747_v37 }
 0x86e   :  { %2114 = vmatprep.subr.bf16.mxu1 %v2573_v1 }
 0x871   :  { %2115 = vmatpush3.bf16.msra.mxu1 %v2754_v38 }
 0x872   :  { %2116 = vmatprep.subr.bf16.mxu1 %v2573_v1 }
 0x875   :  { %2117 = vmatpush3.bf16.msra.mxu1 %v2761_v40 }
 0x876   :  { %2122 = vmatprep.subr.bf16.mxu1 %v2573_v1 }
 0x8c4   :  { %v533_v17 = vpop.permute.xlu0 %532 }
 0x8c5   :  { %v535_v19 = vmul.f32 %v2387_v16, %v533_v17 }
 0x8c7   :  { %537 = vrot.lane.b32.xlu0 %v535_v19, %s2576_s10 }
 0x939   :  { %v538_v22 = vpop.permute.xlu0 %537 }
 0x93a   :  { %v2885_v23 = vadd.f32 %v538_v22, %v530_v21 }
 0x93b   :  { %v638_v24 = vpop.f32.mrb[12].mxu1 }
 0x93c   :  { %2388 = vtanh.f32 %v2885_v23  ;;  %v639_v25 = vadd.f32 %v2730_v20, %v638_v24  ;;  %v2108_v26 = vpop.f32.mrb[13].mxu1 }
 0x93d   :  { %v641_v27 = vpop.f32.mrb[14].mxu1 }
 0x93e   :  { %2390 = vtanh.f32 %v639_v25  ;;  %v2109_v28 = vpop.f32.mrb[15].mxu1  ;;  %v1824_v31 = vmul.f32 -1.442695, %v639_v25 }
 0x940   :  { %2392 = vpow2.f32 %v1824_v31 }
 0x946   :  { %v2389_v29 = vpop.eup %2388 }
 0x947   :  { %543 = vrot.lane.b32.xlu0 %v2389_v29, %s2575_s9 }
 0x948   :  { %v2391_v30 = vpop.eup %2390 }
 0x949   :  { %653 = vrot.lane.b32.xlu1 %v2391_v30, %s2575_s9 }
 0x94a   :  { %v2393_v18 = vpop.eup %2392 }
 0x94b   :  { %v647_v32 = vadd.f32 1.0, %v2393_v18 }
 0x94d   :  { %2394 = vrcp.f32 %v647_v32 }
 0x957   :  { %v2395_v33 = vpop.eup %2394 }
 0x958   :  { %v651_v42 = vmul.f32 %v2395_v33, %v2828_v39 }
 0x9b9   :  { %v544_v46 = vpop.permute.xlu0 %543 }
 0x9ba   :  { %v2897_v47 = vmul.f32 %v2387_v16, %v544_v46 }
 0x9bb   :  { %v654_v34 = vpop.permute.xlu1 %653 }
 0x9bc   :  { %v656_v41 = vmul.f32 %v2395_v33, %v654_v34 }
 0x9be   :  { %658 = vrot.lane.b32.xlu1 %v656_v41, %s2576_s10 }
 0xa30   :  { %v659_v44 = vpop.permute.xlu1 %658 }
 0xa31   :  { %v2893_v45 = vadd.f32 %v659_v44, %v651_v42 }
 0xa33   :  { %2396 = vtanh.f32 %v2893_v45 }
 0xa3d   :  { %v2397_v35 = vpop.eup %2396 }
 0xa3e   :  { %664 = vrot.lane.b32.xlu1 %v2397_v35, %s2575_s9 }
 0xa42   :  { %672 = vrot.lane.b32.xlu1 %v2897_v47, %s2575_s9 }
 0xab0   :  { %v665_v49 = vpop.permute.xlu1 %664 }
 0xab1   :  { %v667_v50 = vmul.f32 %v2395_v33, %v665_v49 }
 0xab3   :  { %669 = vrot.lane.b32.xlu0 %v667_v50, %s2576_s10 }
 0xab4   :  { %v673_v39 = vpop.permute.xlu1 %672 }
 0xab7   :  { %793 = vrot.lane.b32.xlu0 %v667_v50, %s2577_s19 }
 0xb25   :  { %v670_v51 = vpop.permute.xlu0 %669 }
 0xb26   :  { %v675_v52 = vsel %vm250_vm3, %v670_v51, %v673_v39 }
 0xb27   :  { %v676_v53 = vpack.c.bf16 %v675_v52, %v675_v52 }
 0xb29   :  { %2119 = vmatmul.mubr.msk.bf16.vlgmr.msra.gmra.mrb[16].mxu1 %vm283_vm4, %v676_v53  ;;  %v794_v62 = vpop.permute.xlu0 %793 }
 0xb2a   :  { %2123 = vmatpush3.bf16.msra.mxu1 %v2632_v0  ;;  %2138 = vmatprep.mubr.msk.bf16.mxu1 %vm2574_vm0, %v2573_v1 }
 0xb2b   :  { %2124 = vmatprep.subr.bf16.mxu1 %v2573_v1 }
 0xb2e   :  { %2125 = vmatpush3.bf16.msra.mxu1 %v2640_v2 }
 0xb2f   :  { %2126 = vmatprep.subr.bf16.mxu1 %v2573_v1 }
 0xb32   :  { %2127 = vmatpush3.bf16.msra.mxu1 %v2651_v3 }
 0xb33   :  { %2128 = vmatprep.subr.bf16.mxu1 %v2573_v1 }
 0xb36   :  { %2129 = vmatpush3.bf16.msra.mxu1 %v2657_v4 }
 0xb37   :  { %2130 = vmatprep.subr.bf16.mxu1 %v2573_v1 }
 0xb3a   :  { %2131 = vmatpush3.bf16.msra.mxu1 %v2677_v7 }
 0xb3b   :  { %2132 = vmatprep.subr.bf16.mxu1 %v2573_v1 }
 0xb3e   :  { %2133 = vmatpush3.bf16.msra.mxu1 %v2686_v8 }
 0xb3f   :  { %2134 = vmatprep.subr.bf16.mxu1 %v2573_v1 }
 0xb42   :  { %2135 = vmatpush3.bf16.msra.mxu1 %v2693_v9 }
 0xb43   :  { %2136 = vmatprep.subr.bf16.mxu1 %v2573_v1 }
 0xb46   :  { %2137 = vmatpush3.bf16.msra.mxu1 %v2700_v10 }
 0xb47   :  { %2184 = vmatprep.subr.bf16.mxu1 %v2573_v1 }
 0xb49   :  { %2139 = vmatmul.mubr.bf16.vlgmr.msra.gmra.mrb[20].mxu1 %v752_v55 }
 0xb4a   :  { %2185 = vmatpush3.bf16.msra.mxu1 %v2662_v5  ;;  %2190 = vmatprep.mubr.msk.bf16.mxu1 %vm2574_vm0, %v2573_v1 }
 0xb4b   :  { %2186 = vmatprep.subr.bf16.mxu1 %v2573_v1 }
 0xb4e   :  { %2187 = vmatpush3.bf16.msra.mxu1 %v2668_v6 }
 0xb4f   :  { %2188 = vmatprep.subr.bf16.mxu1 %v2573_v1 }
 0xb52   :  { %2189 = vmatpush3.bf16.msra.mxu1 %v2717_v13 }
 0xb53   :  { %2194 = vmatprep.subr.bf16.mxu1 %v2573_v1 }
 0xbfc   :  { %v714_v56 = vpop.f32.mrb[16].mxu1 }
 0xbfd   :  { %v715_v57 = vadd.f32 %v2803_v48, %v714_v56  ;;  %v2120_v58 = vpop.f32.mrb[17].mxu1 }
 0xbfe   :  { %v717_v59 = vpop.f32.mrb[18].mxu1 }
 0xbff   :  { %2398 = vtanh.f32 %v715_v57  ;;  %v2121_v60 = vpop.f32.mrb[19].mxu1  ;;  %v1826_v17 = vmul.f32 -1.442695, %v715_v57 }
 0xc01   :  { %2400 = vpow2.f32 %v1826_v17 }
 0xc09   :  { %v2399_v61 = vpop.eup %2398 }
 0xc0a   :  { %729 = vrot.lane.b32.xlu1 %v2399_v61, %s2575_s9 }
 0xc0b   :  { %v2401_v19 = vpop.eup %2400 }
 0xc0c   :  { %v723_v21 = vadd.f32 1.0, %v2401_v19 }
 0xc0e   :  { %2402 = vrcp.f32 %v723_v21 }
 0xc18   :  { %v2403_v22 = vpop.eup %2402 }
 0xc19   :  { %v727_v26 = vmul.f32 %v2403_v22, %v2885_v23 }
 0xc1c   :  { %v787_v63 = vpop.f32.mrb[20].mxu1 }
 0xc1d   :  { %v796_v11 = vsel %vm151_vm1, %v787_v63, %v794_v62  ;;  %v2140_v12 = vpop.f32.mrb[21].mxu1 }
 0xc1e   :  { %v797_v14 = vpack.c.bf16 %v796_v11, %v796_v11  ;;  %v790_v15 = vpop.f32.mrb[22].mxu1 }
 0xc1f   :  { %v2141_v16 = vpop.f32.mrb[23].mxu1 }
 0xc20   :  { %2149 = vmatmul.mubr.msk.bf16.vlgmr.msra.gmra.mrb[16].mxu0 %vm178_vm2, %v797_v14 }
 0xc21   :  { %2153 = vmatpush3.bf16.msra.mxu0 %v2741_v36  ;;  %2160 = vmatprep.mubr.msk.bf16.mxu0 %vm2574_vm0, %v2573_v1 }
 0xc22   :  { %2154 = vmatprep.subr.bf16.mxu0 %v2573_v1 }
 0xc25   :  { %2155 = vmatpush3.bf16.msra.mxu0 %v2747_v37 }
 0xc26   :  { %2156 = vmatprep.subr.bf16.mxu0 %v2573_v1 }
 0xc29   :  { %2157 = vmatpush3.bf16.msra.mxu0 %v2754_v38 }
 0xc2a   :  { %2158 = vmatprep.subr.bf16.mxu0 %v2573_v1 }
 0xc2d   :  { %2159 = vmatpush3.bf16.msra.mxu0 %v2761_v40 }
 0xc2e   :  { %2164 = vmatprep.subr.bf16.mxu0 %v2573_v1 }
 0xc7c   :  { %v730_v24 = vpop.permute.xlu1 %729 }
 0xc7d   :  { %v732_v25 = vmul.f32 %v2403_v22, %v730_v24 }
 0xc7f   :  { %734 = vrot.lane.b32.xlu1 %v732_v25, %s2576_s10 }
 0xcf1   :  { %v735_v27 = vpop.permute.xlu1 %734 }
 0xcf2   :  { %v2950_v28 = vadd.f32 %v735_v27, %v727_v26 }
 0xcf3   :  { %v835_v29 = vpop.f32.mrb[16].mxu0 }
 0xcf4   :  { %2404 = vtanh.f32 %v2950_v28  ;;  %v836_v30 = vadd.f32 %v2730_v20, %v835_v29  ;;  %v2150_v31 = vpop.f32.mrb[17].mxu0 }
 0xcf5   :  { %v838_v18 = vpop.f32.mrb[18].mxu0 }
 0xcf6   :  { %2406 = vtanh.f32 %v836_v30  ;;  %v2151_v32 = vpop.f32.mrb[19].mxu0  ;;  %v1829_v41 = vmul.f32 -1.442695, %v836_v30 }
 0xcf8   :  { %2408 = vpow2.f32 %v1829_v41 }
 0xcfe   :  { %v2405_v33 = vpop.eup %2404 }
 0xcff   :  { %740 = vrot.lane.b32.xlu1 %v2405_v33, %s2575_s9 }
 0xd00   :  { %v2407_v34 = vpop.eup %2406 }
 0xd01   :  { %850 = vrot.lane.b32.xlu0 %v2407_v34, %s2575_s9 }
 0xd02   :  { %v2409_v23 = vpop.eup %2408 }
 0xd03   :  { %v844_v42 = vadd.f32 1.0, %v2409_v23 }
 0xd05   :  { %2410 = vrcp.f32 %v844_v42 }
 0xd0f   :  { %v2411_v44 = vpop.eup %2410 }
 0xd10   :  { %v848_v49 = vmul.f32 %v2411_v44, %v2893_v45 }
 0xd71   :  { %v741_v52 = vpop.permute.xlu1 %740 }
 0xd72   :  { %v2962_v53 = vmul.f32 %v2403_v22, %v741_v52 }
 0xd73   :  { %v851_v35 = vpop.permute.xlu0 %850 }
 0xd74   :  { %v853_v46 = vmul.f32 %v2411_v44, %v851_v35 }
 0xd76   :  { %855 = vrot.lane.b32.xlu0 %v853_v46, %s2576_s10 }
 0xde8   :  { %v856_v50 = vpop.permute.xlu0 %855 }
 0xde9   :  { %v2958_v39 = vadd.f32 %v856_v50, %v848_v49 }
 0xdeb   :  { %2412 = vtanh.f32 %v2958_v39 }
 0xdf5   :  { %v2413_v51 = vpop.eup %2412 }
 0xdf6   :  { %861 = vrot.lane.b32.xlu0 %v2413_v51, %s2575_s9 }
 0xdfa   :  { %869 = vrot.lane.b32.xlu0 %v2962_v53, %s2575_s9 }
 0xe68   :  { %v862_v54 = vpop.permute.xlu0 %861 }
 0xe69   :  { %v864_v55 = vmul.f32 %v2411_v44, %v862_v54 }
 0xe6b   :  { %866 = vrot.lane.b32.xlu1 %v864_v55, %s2576_s10 }
 0xe6c   :  { %v870_v45 = vpop.permute.xlu0 %869 }
 0xe6f   :  { %990 = vrot.lane.b32.xlu1 %v864_v55, %s2577_s19 }
 0xedd   :  { %v867_v56 = vpop.permute.xlu1 %866 }
 0xede   :  { %v872_v57 = vsel %vm250_vm3, %v867_v56, %v870_v45 }
 0xedf   :  { %v873_v58 = vpack.c.bf16 %v872_v57, %v872_v57 }
 0xee1   :  { %2161 = vmatmul.mubr.msk.bf16.vlgmr.msra.gmra.mrb[20].mxu0 %vm283_vm4, %v873_v58  ;;  %v991_v62 = vpop.permute.xlu1 %990  ;;  %v3038_v58 = vld [vmem:[%s3382_s1] sm:$0xff]  }
 0xee2   :  { %2165 = vmatpush3.bf16.msra.mxu0 %v2632_v0  ;;  %2180 = vmatprep.mubr.msk.bf16.mxu0 %vm2574_vm0, %v2573_v1  ;;  %v1832_v0 = vld [vmem:[%s3381_s0 + $0x20] sm:$0xff] }
 0xee3   :  { %2166 = vmatprep.subr.bf16.mxu0 %v2573_v1 }
 0xee6   :  { %2167 = vmatpush3.bf16.msra.mxu0 %v2640_v2  ;;  %v949_v2 = vpack.c.bf16 %v1832_v0, %v1832_v0  ;;  %v3047_v0 = vld [vmem:[%s3382_s1 + $0x8] sm:$0xff]  }
 0xee7   :  { %2168 = vmatprep.subr.bf16.mxu0 %v2573_v1 }
 0xeea   :  { %2169 = vmatpush3.bf16.msra.mxu0 %v2651_v3 }
 0xeeb   :  { %2170 = vmatprep.subr.bf16.mxu0 %v2573_v1 }
 0xeee   :  { %2171 = vmatpush3.bf16.msra.mxu0 %v2657_v4 }
 0xeef   :  { %2172 = vmatprep.subr.bf16.mxu0 %v2573_v1 }
 0xef2   :  { %2173 = vmatpush3.bf16.msra.mxu0 %v2677_v7 }
 0xef3   :  { %2174 = vmatprep.subr.bf16.mxu0 %v2573_v1 }
 0xef6   :  { %2175 = vmatpush3.bf16.msra.mxu0 %v2686_v8 }
 0xef7   :  { %2176 = vmatprep.subr.bf16.mxu0 %v2573_v1 }
 0xefa   :  { %2177 = vmatpush3.bf16.msra.mxu0 %v2693_v9 }
 0xefb   :  { %2178 = vmatprep.subr.bf16.mxu0 %v2573_v1 }
 0xefe   :  { %2179 = vmatpush3.bf16.msra.mxu0 %v2700_v10 }
 0xeff   :  { %2226 = vmatprep.subr.bf16.mxu0 %v2573_v1 }
 0xf01   :  { %2181 = vmatmul.mubr.bf16.vlgmr.msra.gmra.mrb[24].mxu0 %v949_v2  ;;  %v3054_v2 = vld [vmem:[%s3382_s1 + $0x10] sm:$0xff]  }
 0xf02   :  { %2227 = vmatpush3.bf16.msra.mxu0 %v2662_v5  ;;  %2232 = vmatprep.mubr.msk.bf16.mxu0 %vm2574_vm0, %v2573_v1 }
 0xf03   :  { %2228 = vmatprep.subr.bf16.mxu0 %v2573_v1 }
 0xf06   :  { %2229 = vmatpush3.bf16.msra.mxu0 %v2668_v6 }
 0xf07   :  { %2230 = vmatprep.subr.bf16.mxu0 %v2573_v1 }
 0xf0a   :  { %2231 = vmatpush3.bf16.msra.mxu0 %v2717_v13 }
 0xf0b   :  { %2236 = vmatprep.subr.bf16.mxu0 %v2573_v1 }
 0xfb4   :  { %v911_v3 = vpop.f32.mrb[20].mxu0 }
 0xfb5   :  { %v912_v4 = vadd.f32 %v2803_v48, %v911_v3  ;;  %v2162_v59 = vpop.f32.mrb[21].mxu0  ;;  %v3061_v3 = vld [vmem:[%s3382_s1 + $0x18] sm:$0xff]  }
 0xfb6   :  { %v914_v60 = vpop.f32.mrb[22].mxu0 }
 0xfb7   :  { %2414 = vtanh.f32 %v912_v4  ;;  %v2163_v5 = vpop.f32.mrb[23].mxu0  ;;  %v1831_v16 = vmul.f32 -1.442695, %v912_v4  ;;  %v1837_v4 = vld [vmem:[%s3381_s0 + $0x28] sm:$0xff] }
 0xfb8   :  { %v1146_v59 = vpack.c.bf16 %v1837_v4, %v1837_v4  ;;  %v1842_v4 = vld [vmem:[%s3381_s0 + $0x30] sm:$0xff] }
 0xfb9   :  { %2416 = vpow2.f32 %v1831_v16 }
 0xfc1   :  { %v2415_v61 = vpop.eup %2414 }
 0xfc2   :  { %926 = vrot.lane.b32.xlu0 %v2415_v61, %s2575_s9 }
 0xfc3   :  { %v2417_v17 = vpop.eup %2416 }
 0xfc4   :  { %v920_v19 = vadd.f32 1.0, %v2417_v17 }
 0xfc6   :  { %2418 = vrcp.f32 %v920_v19 }
 0xfd0   :  { %v2419_v21 = vpop.eup %2418 }
 0xfd1   :  { %v924_v25 = vmul.f32 %v2419_v21, %v2950_v28 }
 0xfd4   :  { %v984_v63 = vpop.f32.mrb[24].mxu0 }
 0xfd5   :  { %v993_v6 = vsel %vm151_vm1, %v984_v63, %v991_v62  ;;  %v2182_v11 = vpop.f32.mrb[25].mxu0 }
 0xfd6   :  { %v994_v12 = vpack.c.bf16 %v993_v6, %v993_v6  ;;  %v987_v14 = vpop.f32.mrb[26].mxu0 }
 0xfd7   :  { %v2183_v15 = vpop.f32.mrb[27].mxu0 }
 0xfd8   :  { %2191 = vmatmul.mubr.msk.bf16.vlgmr.msra.gmra.mrb[24].mxu1 %vm178_vm2, %v994_v12 }
 0xfd9   :  { %2195 = vmatpush3.bf16.msra.mxu1 %v2741_v36  ;;  %2202 = vmatprep.mubr.msk.bf16.mxu1 %vm2574_vm0, %v2573_v1 }
 0xfda   :  { %2196 = vmatprep.subr.bf16.mxu1 %v2573_v1 }
 0xfdd   :  { %2197 = vmatpush3.bf16.msra.mxu1 %v2747_v37 }
 0xfde   :  { %2198 = vmatprep.subr.bf16.mxu1 %v2573_v1 }
 0xfe1   :  { %2199 = vmatpush3.bf16.msra.mxu1 %v2754_v38 }
 0xfe2   :  { %2200 = vmatprep.subr.bf16.mxu1 %v2573_v1 }
 0xfe5   :  { %2201 = vmatpush3.bf16.msra.mxu1 %v2761_v40 }
 0xfe6   :  { %2206 = vmatprep.subr.bf16.mxu1 %v2573_v1 }
0x1034   :  { %v927_v22 = vpop.permute.xlu0 %926 }
0x1035   :  { %v929_v24 = vmul.f32 %v2419_v21, %v927_v22 }
0x1037   :  { %931 = vrot.lane.b32.xlu0 %v929_v24, %s2576_s10 }
0x10a9   :  { %v932_v26 = vpop.permute.xlu0 %931 }
0x10aa   :  { %v3015_v27 = vadd.f32 %v932_v26, %v924_v25 }
0x10ab   :  { %v1032_v29 = vpop.f32.mrb[24].mxu1 }
0x10ac   :  { %2420 = vtanh.f32 %v3015_v27  ;;  %v1033_v30 = vadd.f32 %v2730_v20, %v1032_v29  ;;  %v2192_v31 = vpop.f32.mrb[25].mxu1 }
0x10ad   :  { %v1035_v18 = vpop.f32.mrb[26].mxu1 }
0x10ae   :  { %2422 = vtanh.f32 %v1033_v30  ;;  %v2193_v32 = vpop.f32.mrb[27].mxu1  ;;  %v1834_v41 = vmul.f32 -1.442695, %v1033_v30 }
0x10b0   :  { %2424 = vpow2.f32 %v1834_v41 }
0x10b6   :  { %v2421_v33 = vpop.eup %2420 }
0x10b7   :  { %937 = vrot.lane.b32.xlu0 %v2421_v33, %s2575_s9 }
0x10b8   :  { %v2423_v34 = vpop.eup %2422 }
0x10b9   :  { %1047 = vrot.lane.b32.xlu1 %v2423_v34, %s2575_s9 }
0x10ba   :  { %v2425_v28 = vpop.eup %2424 }
0x10bb   :  { %v1041_v23 = vadd.f32 1.0, %v2425_v28 }
0x10bd   :  { %2426 = vrcp.f32 %v1041_v23 }
0x10c7   :  { %v2427_v42 = vpop.eup %2426 }
0x10c8   :  { %v1045_v20 = vmul.f32 %v2427_v42, %v2958_v39 }
0x1129   :  { %v938_v51 = vpop.permute.xlu0 %937 }
0x112a   :  { %v3027_v52 = vmul.f32 %v2419_v21, %v938_v51 }
0x112b   :  { %v1048_v44 = vpop.permute.xlu1 %1047 }
0x112c   :  { %v1050_v35 = vmul.f32 %v2427_v42, %v1048_v44 }
0x112e   :  { %1052 = vrot.lane.b32.xlu1 %v1050_v35, %s2576_s10 }
0x11a0   :  { %v1053_v46 = vpop.permute.xlu1 %1052 }
0x11a1   :  { %v3023_v49 = vadd.f32 %v1053_v46, %v1045_v20 }
0x11a3   :  { %2428 = vtanh.f32 %v3023_v49 }
0x11ad   :  { %v2429_v50 = vpop.eup %2428 }
0x11ae   :  { %1058 = vrot.lane.b32.xlu1 %v2429_v50, %s2575_s9 }
0x11b2   :  { %1066 = vrot.lane.b32.xlu1 %v3027_v52, %s2575_s9 }
0x1220   :  { %v1059_v54 = vpop.permute.xlu1 %1058 }
0x1221   :  { %v1061_v55 = vmul.f32 %v2427_v42, %v1059_v54 }
0x1223   :  { %1063 = vrot.lane.b32.xlu0 %v1061_v55, %s2576_s10 }
0x1224   :  { %v1067_v39 = vpop.permute.xlu1 %1066 }
0x1227   :  { %1187 = vrot.lane.b32.xlu0 %v1061_v55, %s2577_s19 }
0x1295   :  { %v1064_v45 = vpop.permute.xlu0 %1063 }
0x1296   :  { %v1069_v56 = vsel %vm250_vm3, %v1064_v45, %v1067_v39  ;;  %v3148_v45 = vld [vmem:[%s3382_s1 + $0x20] sm:$0xff]  }
0x1297   :  { %v1070_v57 = vpack.c.bf16 %v1069_v56, %v1069_v56  ;;  %v3155_v56 = vld [vmem:[%s3382_s1 + $0x28] sm:$0xff]  }
0x1299   :  { %2203 = vmatmul.mubr.msk.bf16.vlgmr.msra.gmra.mrb[28].mxu1 %vm283_vm4, %v1070_v57  ;;  %v1188_v63 = vpop.permute.xlu0 %1187  ;;  %v3162_v57 = vld [vmem:[%s3382_s1 + $0x30] sm:$0xff]  }
0x129a   :  { %2207 = vmatpush3.bf16.msra.mxu1 %v3038_v58  ;;  %2222 = vmatprep.mubr.msk.bf16.mxu1 %vm2574_vm0, %v2573_v1 }
0x129b   :  { %2208 = vmatprep.subr.bf16.mxu1 %v2573_v1 }
0x129e   :  { %2209 = vmatpush3.bf16.msra.mxu1 %v3047_v0 }
0x129f   :  { %2210 = vmatprep.subr.bf16.mxu1 %v2573_v1 }
0x12a2   :  { %2211 = vmatpush3.bf16.msra.mxu1 %v3054_v2 }
0x12a3   :  { %2212 = vmatprep.subr.bf16.mxu1 %v2573_v1 }
0x12a6   :  { %2213 = vmatpush3.bf16.msra.mxu1 %v3061_v3 }
0x12a7   :  { %2214 = vmatprep.subr.bf16.mxu1 %v2573_v1 }
0x12aa   :  { %2215 = vmatpush3.bf16.msra.mxu1 %v2677_v7  ;;  %v3079_v7 = vld [vmem:[%s3383_s2] sm:$0xff]  }
0x12ab   :  { %2216 = vmatprep.subr.bf16.mxu1 %v2573_v1 }
0x12ae   :  { %2217 = vmatpush3.bf16.msra.mxu1 %v2686_v8  ;;  %v3088_v8 = vld [vmem:[%s3383_s2 + $0x8] sm:$0xff]  }
0x12af   :  { %2218 = vmatprep.subr.bf16.mxu1 %v2573_v1 }
0x12b2   :  { %2219 = vmatpush3.bf16.msra.mxu1 %v2693_v9 }
0x12b3   :  { %2220 = vmatprep.subr.bf16.mxu1 %v2573_v1 }
0x12b6   :  { %2221 = vmatpush3.bf16.msra.mxu1 %v2700_v10 }
0x12b7   :  { %2268 = vmatprep.subr.bf16.mxu1 %v2573_v1 }
0x12b9   :  { %2223 = vmatmul.mubr.bf16.vlgmr.msra.gmra.mrb[32].mxu1 %v1146_v59  ;;  %v1343_v59 = vpack.c.bf16 %v1842_v4, %v1842_v4 }
0x12ba   :  { %2269 = vmatpush3.bf16.msra.mxu1 %v3079_v7  ;;  %2274 = vmatprep.mubr.msk.bf16.mxu1 %vm2574_vm0, %v2573_v1 }
0x12bb   :  { %2270 = vmatprep.subr.bf16.mxu1 %v2573_v1 }
0x12be   :  { %2271 = vmatpush3.bf16.msra.mxu1 %v3088_v8 }
0x12bf   :  { %2272 = vmatprep.subr.bf16.mxu1 %v2573_v1 }
0x12c2   :  { %2273 = vmatpush3.bf16.msra.mxu1 %v2717_v13 }
0x12c3   :  { %2278 = vmatprep.subr.bf16.mxu1 %v2573_v1 }
0x136c   :  { %v1108_v9 = vpop.f32.mrb[28].mxu1 }
0x136d   :  { %v1109_v10 = vadd.f32 %v2803_v48, %v1108_v9  ;;  %v2204_v60 = vpop.f32.mrb[29].mxu1  ;;  %v3172_v9 = vld [vmem:[%s3382_s1 + $0x38] sm:$0xff]  }
0x136e   :  { %v1111_v5 = vpop.f32.mrb[30].mxu1 }
0x136f   :  { %2430 = vtanh.f32 %v1109_v10  ;;  %v2205_v61 = vpop.f32.mrb[31].mxu1  ;;  %v1836_v48 = vmul.f32 -1.442695, %v1109_v10  ;;  %v2497_v10 = vld [vmem:[%s3383_s2 + $0x10] sm:$0xff]  }
0x1371   :  { %2432 = vpow2.f32 %v1836_v48 }
0x1379   :  { %v2431_v62 = vpop.eup %2430 }
0x137a   :  { %1123 = vrot.lane.b32.xlu1 %v2431_v62, %s2575_s9 }
0x138c   :  { %v1181_v6 = vpop.f32.mrb[32].mxu1 }
0x138d   :  { %v1190_v11 = vsel %vm151_vm1, %v1181_v6, %v1188_v63  ;;  %v2224_v12 = vpop.f32.mrb[33].mxu1 }
0x138e   :  { %v1191_v14 = vpack.c.bf16 %v1190_v11, %v1190_v11  ;;  %v1184_v15 = vpop.f32.mrb[34].mxu1 }
0x138f   :  { %v2225_v13 = vpop.f32.mrb[35].mxu1 }
0x1390   :  { %2233 = vmatmul.mubr.msk.bf16.vlgmr.msra.gmra.mrb[28].mxu0 %vm178_vm2, %v1191_v14 }
0x1391   :  { %2237 = vmatpush3.bf16.msra.mxu0 %v2741_v36  ;;  %2244 = vmatprep.mubr.msk.bf16.mxu0 %vm2574_vm0, %v2573_v1  ;;  %v2433_v36 = vpop.eup %2432 }
0x1392   :  { %2238 = vmatprep.subr.bf16.mxu0 %v2573_v1  ;;  %v1117_v16 = vadd.f32 1.0, %v2433_v36  ;;  %v3198_v36 = vld [vmem:[%s3385_s4] sm:$0xff]  }
0x1394   :  { %2434 = vrcp.f32 %v1117_v16  ;;  %v3207_v16 = vld [vmem:[%s3385_s4 + $0x8] sm:$0xff]  }
0x1395   :  { %2239 = vmatpush3.bf16.msra.mxu0 %v2747_v37 }
0x1396   :  { %2240 = vmatprep.subr.bf16.mxu0 %v2573_v1 }
0x1399   :  { %2241 = vmatpush3.bf16.msra.mxu0 %v2754_v38 }
0x139a   :  { %2242 = vmatprep.subr.bf16.mxu0 %v2573_v1 }
0x139d   :  { %2243 = vmatpush3.bf16.msra.mxu0 %v2761_v40  ;;  %v3116_v40 = vld [vmem:[%s3384_s3] ss:$0 sm:$0xff]  ;;  %s2580_s3 = smov [#allocation2]  }
0x139e   :  { %2248 = vmatprep.subr.bf16.mxu0 %v2573_v1  ;;  %v2435_v17 = vpop.eup %2434 }
0x139f   :  { %v1121_v37 = vmul.f32 %v2435_v17, %v3015_v27 }
0x13ec   :  { %v1124_v19 = vpop.permute.xlu1 %1123 }
0x13ed   :  { %v1126_v21 = vmul.f32 %v2435_v17, %v1124_v19  ;;  %v3221_v19 = vld [vmem:[%s3385_s4 + $0x18] sm:$0xff]  }
0x13ef   :  { %1128 = vrot.lane.b32.xlu1 %v1126_v21, %s2576_s10 }
0x1461   :  { %v1129_v22 = vpop.permute.xlu1 %1128 }
0x1462   :  { %v3110_v38 = vadd.f32 %v1129_v22, %v1121_v37 }
0x1463   :  { %v1229_v24 = vpop.f32.mrb[28].mxu0 }
0x1464   :  { %2436 = vtanh.f32 %v3110_v38  ;;  %v1230_v25 = vadd.f32 %v3116_v40, %v1229_v24  ;;  %v2234_v26 = vpop.f32.mrb[29].mxu0 }
0x1465   :  { %v1232_v29 = vpop.f32.mrb[30].mxu0 }
0x1466   :  { %2438 = vtanh.f32 %v1230_v25  ;;  %v2235_v30 = vpop.f32.mrb[31].mxu0  ;;  %v1839_v18 = vmul.f32 -1.442695, %v1230_v25 }
0x1468   :  { %2440 = vpow2.f32 %v1839_v18 }
0x146e   :  { %v2437_v31 = vpop.eup %2436 }
0x146f   :  { %1134 = vrot.lane.b32.xlu1 %v2437_v31, %s2575_s9 }
0x1470   :  { %v2439_v27 = vpop.eup %2438 }
0x1471   :  { %1244 = vrot.lane.b32.xlu0 %v2439_v27, %s2575_s9 }
0x1472   :  { %v2441_v32 = vpop.eup %2440 }
0x1473   :  { %v1238_v33 = vadd.f32 1.0, %v2441_v32 }
0x1475   :  { %2442 = vrcp.f32 %v1238_v33 }
0x147f   :  { %v2443_v34 = vpop.eup %2442 }
0x1480   :  { %v1242_v23 = vmul.f32 %v2443_v34, %v3023_v49 }
0x14e1   :  { %v1135_v20 = vpop.permute.xlu1 %1134 }
0x14e2   :  { %v3127_v46 = vmul.f32 %v2435_v17, %v1135_v20  ;;  %v3214_v17 = vld [vmem:[%s3385_s4 + $0x10] sm:$0xff]  }
0x14e3   :  { %v1245_v41 = vpop.permute.xlu0 %1244 }
0x14e4   :  { %v1247_v28 = vmul.f32 %v2443_v34, %v1245_v41 }
0x14e6   :  { %1249 = vrot.lane.b32.xlu0 %v1247_v28, %s2576_s10 }
0x1558   :  { %v1250_v42 = vpop.permute.xlu0 %1249 }
0x1559   :  { %v3123_v44 = vadd.f32 %v1250_v42, %v1242_v23 }
0x155b   :  { %2444 = vtanh.f32 %v3123_v44 }
0x1565   :  { %v2445_v35 = vpop.eup %2444 }
0x1566   :  { %1255 = vrot.lane.b32.xlu0 %v2445_v35, %s2575_s9 }
0x156a   :  { %1263 = vrot.lane.b32.xlu0 %v3127_v46, %s2575_s9 }
0x15d8   :  { %v1256_v50 = vpop.permute.xlu0 %1255 }
0x15d9   :  { %v1258_v51 = vmul.f32 %v2443_v34, %v1256_v50 }
0x15db   :  { %1260 = vrot.lane.b32.xlu1 %v1258_v51, %s2576_s10 }
0x15dc   :  { %v1264_v49 = vpop.permute.xlu0 %1263 }
0x15df   :  { %1384 = vrot.lane.b32.xlu1 %v1258_v51, %s2577_s19 }
0x164d   :  { %v1261_v54 = vpop.permute.xlu1 %1260 }
0x164e   :  { %v1266_v55 = vsel %vm250_vm3, %v1261_v54, %v1264_v49 }
0x164f   :  { %v1267_v39 = vpack.c.bf16 %v1266_v55, %v1266_v55 }
0x1651   :  { %2245 = vmatmul.mubr.msk.bf16.vlgmr.msra.gmra.mrb[32].mxu0 %vm283_vm4, %v1267_v39  ;;  %v1385_v6 = vpop.permute.xlu1 %1384 }
0x1652   :  { %2249 = vmatpush3.bf16.msra.mxu0 %v3038_v58  ;;  %2264 = vmatprep.mubr.msk.bf16.mxu0 %vm2574_vm0, %v2573_v1 }
0x1653   :  { %2250 = vmatprep.subr.bf16.mxu0 %v2573_v1 }
0x1656   :  { %2251 = vmatpush3.bf16.msra.mxu0 %v3047_v0 }
0x1657   :  { %2252 = vmatprep.subr.bf16.mxu0 %v2573_v1 }
0x165a   :  { %2253 = vmatpush3.bf16.msra.mxu0 %v3054_v2 }
0x165b   :  { %2254 = vmatprep.subr.bf16.mxu0 %v2573_v1 }
0x165e   :  { %2255 = vmatpush3.bf16.msra.mxu0 %v3061_v3 }
0x165f   :  { %2256 = vmatprep.subr.bf16.mxu0 %v2573_v1 }
0x1662   :  { %2257 = vmatpush3.bf16.msra.mxu0 %v3148_v45 }
0x1663   :  { %2258 = vmatprep.subr.bf16.mxu0 %v2573_v1 }
0x1666   :  { %2259 = vmatpush3.bf16.msra.mxu0 %v3155_v56 }
0x1667   :  { %2260 = vmatprep.subr.bf16.mxu0 %v2573_v1 }
0x166a   :  { %2261 = vmatpush3.bf16.msra.mxu0 %v3162_v57 }
0x166b   :  { %2262 = vmatprep.subr.bf16.mxu0 %v2573_v1 }
0x166e   :  { %2263 = vmatpush3.bf16.msra.mxu0 %v3172_v9 }
0x166f   :  { %2310 = vmatprep.subr.bf16.mxu0 %v2573_v1 }
0x1671   :  { %2265 = vmatmul.mubr.bf16.vlgmr.msra.gmra.mrb[36].mxu0 %v1343_v59 }
0x1672   :  { %2311 = vmatpush3.bf16.msra.mxu0 %v3079_v7  ;;  %2316 = vmatprep.mubr.msk.bf16.mxu0 %vm2574_vm0, %v2573_v1  ;;  %v3189_v7 = vld [vmem:[%s3386_s5] ss:$0 sm:$0xff] }
0x1673   :  { %2312 = vmatprep.subr.bf16.mxu0 %v2573_v1 }
0x1676   :  { %2313 = vmatpush3.bf16.msra.mxu0 %v3088_v8 }
0x1677   :  { %2314 = vmatprep.subr.bf16.mxu0 %v2573_v1 }
0x167a   :  { %2315 = vmatpush3.bf16.msra.mxu0 %v2497_v10 }
0x167b   :  { %2320 = vmatprep.subr.bf16.mxu0 %v2573_v1 }
0x1724   :  { %v1305_v60 = vpop.f32.mrb[32].mxu0 }
0x1725   :  { %v1306_v5 = vadd.f32 %v3189_v7, %v1305_v60  ;;  %v2246_v61 = vpop.f32.mrb[33].mxu0 }
0x1726   :  { %v1308_v62 = vpop.f32.mrb[34].mxu0 }
0x1727   :  { %2446 = vtanh.f32 %v1306_v5  ;;  %v2247_v8 = vpop.f32.mrb[35].mxu0  ;;  %v1841_v21 = vmul.f32 -1.442695, %v1306_v5 }
0x1729   :  { %2448 = vpow2.f32 %v1841_v21 }
0x1731   :  { %v2447_v63 = vpop.eup %2446 }
0x1732   :  { %1320 = vrot.lane.b32.xlu0 %v2447_v63, %s2575_s9 }
0x1733   :  { %v2449_v37 = vpop.eup %2448 }
0x1734   :  { %v1314_v22 = vadd.f32 1.0, %v2449_v37 }
0x1736   :  { %2450 = vrcp.f32 %v1314_v22 }
0x1740   :  { %v2451_v24 = vpop.eup %2450 }
0x1741   :  { %v1318_v29 = vmul.f32 %v2451_v24, %v3110_v38 }
0x1744   :  { %v1378_v11 = vpop.f32.mrb[36].mxu0 }
0x1745   :  { %v1387_v12 = vsel %vm151_vm1, %v1378_v11, %v1385_v6  ;;  %v2266_v14 = vpop.f32.mrb[37].mxu0 }
0x1746   :  { %v1388_v15 = vpack.c.bf16 %v1387_v12, %v1387_v12  ;;  %v1381_v13 = vpop.f32.mrb[38].mxu0 }
0x1747   :  { %v2267_v48 = vpop.f32.mrb[39].mxu0 }
0x1748   :  { %2275 = vmatmul.mubr.msk.bf16.vlgmr.msra.gmra.mrb[36].mxu1 %vm178_vm2, %v1388_v15 }
0x1749   :  { %2279 = vmatpush3.bf16.msra.mxu1 %v3198_v36  ;;  %2286 = vmatprep.mubr.msk.bf16.mxu1 %vm2574_vm0, %v2573_v1 }
0x174a   :  { %2280 = vmatprep.subr.bf16.mxu1 %v2573_v1 }
0x174d   :  { %2281 = vmatpush3.bf16.msra.mxu1 %v3207_v16 }
0x174e   :  { %2282 = vmatprep.subr.bf16.mxu1 %v2573_v1 }
0x1751   :  { %2283 = vmatpush3.bf16.msra.mxu1 %v3214_v17 }
0x1752   :  { %2284 = vmatprep.subr.bf16.mxu1 %v2573_v1 }
0x1755   :  { %2285 = vmatpush3.bf16.msra.mxu1 %v3221_v19 }
0x1756   :  { %2290 = vmatprep.subr.bf16.mxu1 %v2573_v1 }
0x17a4   :  { %v1321_v25 = vpop.permute.xlu0 %1320 }
0x17a5   :  { %v1323_v26 = vmul.f32 %v2451_v24, %v1321_v25 }
0x17a7   :  { %1325 = vrot.lane.b32.xlu0 %v1323_v26, %s2576_s10 }
0x1819   :  { %v1326_v30 = vpop.permute.xlu0 %1325 }
0x181a   :  { %v3227_v31 = vadd.f32 %v1326_v30, %v1318_v29 }
0x181b   :  { %v1426_v27 = vpop.f32.mrb[36].mxu1 }
0x181c   :  { %2452 = vtanh.f32 %v3227_v31  ;;  %v1427_v18 = vadd.f32 %v3116_v40, %v1426_v27  ;;  %v2276_v32 = vpop.f32.mrb[37].mxu1 }
0x181d   :  { %v1429_v33 = vpop.f32.mrb[38].mxu1 }
0x181e   :  { %2454 = vtanh.f32 %v1427_v18  ;;  %v2277_v34 = vpop.f32.mrb[39].mxu1  ;;  %v1844_v23 = vmul.f32 -1.442695, %v1427_v18 }
0x1820   :  { %2456 = vpow2.f32 %v1844_v23 }
0x1826   :  { %v2453_v41 = vpop.eup %2452 }
0x1827   :  { %1331 = vrot.lane.b32.xlu0 %v2453_v41, %s2575_s9 }
0x1828   :  { %v2455_v28 = vpop.eup %2454 }
0x1829   :  { %1441 = vrot.lane.b32.xlu1 %v2455_v28, %s2575_s9 }
0x182a   :  { %v2457_v38 = vpop.eup %2456 }
0x182b   :  { %v1435_v42 = vadd.f32 1.0, %v2457_v38 }
0x182d   :  { %2458 = vrcp.f32 %v1435_v42 }
0x1837   :  { %v2459_v35 = vpop.eup %2458 }
0x1838   :  { %v1439_v51 = vmul.f32 %v2459_v35, %v3123_v44 }
0x1899   :  { %v1332_v39 = vpop.permute.xlu0 %1331 }
0x189a   :  { %v3239_v4 = vmul.f32 %v2451_v24, %v1332_v39 }
0x189b   :  { %v1442_v20 = vpop.permute.xlu1 %1441 }
0x189c   :  { %v1444_v50 = vmul.f32 %v2459_v35, %v1442_v20 }
0x189e   :  { %1446 = vrot.lane.b32.xlu1 %v1444_v50, %s2576_s10 }
0x1910   :  { %v1447_v49 = vpop.permute.xlu1 %1446 }
0x1911   :  { %v3235_v54 = vadd.f32 %v1447_v49, %v1439_v51 }
0x1913   :  { %2460 = vtanh.f32 %v3235_v54 }
0x191d   :  { %v2461_v55 = vpop.eup %2460 }
0x191e   :  { %1452 = vrot.lane.b32.xlu1 %v2461_v55, %s2575_s9 }
0x1922   :  { %1460 = vrot.lane.b32.xlu1 %v3239_v4, %s2575_s9 }
0x1990   :  { %v1453_v59 = vpop.permute.xlu1 %1452 }
0x1991   :  { %v1455_v10 = vmul.f32 %v2459_v35, %v1453_v59 }
0x1993   :  { %1457 = vrot.lane.b32.xlu0 %v1455_v10, %s2576_s10 }
0x1994   :  { %v1461_v44 = vpop.permute.xlu1 %1460 }
0x1997   :  { %1581 = vrot.lane.b32.xlu0 %v1455_v10, %s2577_s19 }
0x1a05   :  { %v1458_v60 = vpop.permute.xlu0 %1457 }
0x1a06   :  { %v1463_v5 = vsel %vm250_vm3, %v1458_v60, %v1461_v44 }
0x1a07   :  { %v1464_v61 = vpack.c.bf16 %v1463_v5, %v1463_v5 }
0x1a09   :  { %2287 = vmatmul.mubr.msk.bf16.vlgmr.msra.gmra.mrb[40].mxu1 %vm283_vm4, %v1464_v61 }
0x1a0a   :  { %2291 = vmatpush3.bf16.msra.mxu1 %v3038_v58  ;;  %2306 = vmatprep.mubr.msk.bf16.mxu1 %vm2574_vm0, %v2573_v1  ;;  %v1847_v58 = vld [vmem:[%s3381_s0 + $0x38] sm:$0xff]  ;;  %s2578_s0 = smov 96  }
0x1a0b   :  { %2292 = vmatprep.subr.bf16.mxu1 %v2573_v1 }
0x1a0e   :  { %2293 = vmatpush3.bf16.msra.mxu1 %v3047_v0  ;;  %v1540_v0 = vpack.c.bf16 %v1847_v58, %v1847_v58 }
0x1a0f   :  { %2294 = vmatprep.subr.bf16.mxu1 %v2573_v1 }
0x1a12   :  { %2295 = vmatpush3.bf16.msra.mxu1 %v3054_v2 }
0x1a13   :  { %2296 = vmatprep.subr.bf16.mxu1 %v2573_v1 }
0x1a16   :  { %2297 = vmatpush3.bf16.msra.mxu1 %v3061_v3 }
0x1a17   :  { %2298 = vmatprep.subr.bf16.mxu1 %v2573_v1 }
0x1a1a   :  { %2299 = vmatpush3.bf16.msra.mxu1 %v3148_v45 }
0x1a1b   :  { %2300 = vmatprep.subr.bf16.mxu1 %v2573_v1 }
0x1a1e   :  { %2301 = vmatpush3.bf16.msra.mxu1 %v3155_v56 }
0x1a1f   :  { %2302 = vmatprep.subr.bf16.mxu1 %v2573_v1 }
0x1a22   :  { %2303 = vmatpush3.bf16.msra.mxu1 %v3162_v57  ;;  %v1582_v57 = vpop.permute.xlu0 %1581 }
0x1a23   :  { %2304 = vmatprep.subr.bf16.mxu1 %v2573_v1 }
0x1a26   :  { %2305 = vmatpush3.bf16.msra.mxu1 %v3172_v9 }
0x1a29   :  { %2307 = vmatmul.mubr.bf16.vlgmr.msra.gmra.mrb[44].mxu1 %v1540_v0 }
0x1adc   :  { %v1502_v2 = vpop.f32.mrb[40].mxu1 }
0x1add   :  { %v1503_v3 = vadd.f32 %v3189_v7, %v1502_v2  ;;  %v2288_v45 = vpop.f32.mrb[41].mxu1 }
0x1ade   :  { %v1505_v62 = vpop.f32.mrb[42].mxu1 }
0x1adf   :  { %2462 = vtanh.f32 %v1503_v3  ;;  %v2289_v56 = vpop.f32.mrb[43].mxu1  ;;  %v1846_v9 = vmul.f32 -1.442695, %v1503_v3 }
0x1ae1   :  { %2464 = vpow2.f32 %v1846_v9 }
0x1ae9   :  { %v2463_v8 = vpop.eup %2462 }
0x1aea   :  { %1517 = vrot.lane.b32.xlu1 %v2463_v8, %s2575_s9 }
0x1aeb   :  { %v2465_v13 = vpop.eup %2464 }
0x1aec   :  { %v1511_v48 = vadd.f32 1.0, %v2465_v13 }
0x1aee   :  { %2466 = vrcp.f32 %v1511_v48 }
0x1afc   :  { %v1575_v63 = vpop.f32.mrb[44].mxu1 }
0x1afd   :  { %v1584_v6 = vsel %vm151_vm1, %v1575_v63, %v1582_v57  ;;  %v2308_v11 = vpop.f32.mrb[45].mxu1 }
0x1afe   :  { %v1585_v12 = vpack.c.bf16 %v1584_v6, %v1584_v6  ;;  %v1578_v14 = vpop.f32.mrb[46].mxu1 }
0x1aff   :  { %v2309_v15 = vpop.f32.mrb[47].mxu1 }
0x1b00   :  { %2317 = vmatmul.mubr.msk.bf16.vlgmr.msra.gmra.mrb[40].mxu0 %vm178_vm2, %v1585_v12 }
0x1b01   :  { %2321 = vmatpush3.bf16.msra.mxu0 %v3198_v36  ;;  %2328 = vmatprep.mubr.msk.bf16.mxu0 %vm2574_vm0, %v2573_v1  ;;  %v2467_v36 = vpop.eup %2466 }
0x1b02   :  { %2322 = vmatprep.subr.bf16.mxu0 %v2573_v1 }
0x1b05   :  { %2323 = vmatpush3.bf16.msra.mxu0 %v3207_v16  ;;  %v1515_v16 = vmul.f32 %v2467_v36, %v3227_v31 }
0x1b06   :  { %2324 = vmatprep.subr.bf16.mxu0 %v2573_v1 }
0x1b09   :  { %2325 = vmatpush3.bf16.msra.mxu0 %v3214_v17 }
0x1b0a   :  { %2326 = vmatprep.subr.bf16.mxu0 %v2573_v1 }
0x1b0d   :  { %2327 = vmatpush3.bf16.msra.mxu0 %v3221_v19 }
0x1b5c   :  { %v1518_v21 = vpop.permute.xlu1 %1517 }
0x1b5d   :  { %v1520_v37 = vmul.f32 %v2467_v36, %v1518_v21 }
0x1b5f   :  { %1522 = vrot.lane.b32.xlu1 %v1520_v37, %s2576_s10 }
0x1bd1   :  { %v1523_v22 = vpop.permute.xlu1 %1522 }
0x1bd2   :  { %v1525_v24 = vadd.f32 %v1523_v22, %v1515_v16 }
0x1bd3   :  { %v1623_v25 = vpop.f32.mrb[40].mxu0 }
0x1bd4   :  { %2468 = vtanh.f32 %v1525_v24  ;;  %v1624_v1 = vadd.f32 %v3116_v40, %v1623_v25  ;;  %v2318_v17 = vpop.f32.mrb[41].mxu0 }
0x1bd5   :  { %v1626_v19 = vpop.f32.mrb[42].mxu0 }
0x1bd6   :  { %2470 = vtanh.f32 %v1624_v1  ;;  %v2319_v26 = vpop.f32.mrb[43].mxu0  ;;  %v1849_v27 = vmul.f32 -1.442695, %v1624_v1 }
0x1bd8   :  { %2472 = vpow2.f32 %v1849_v27 }
0x1bde   :  { %v2469_v29 = vpop.eup %2468 }
0x1bdf   :  { %1528 = vrot.lane.b32.xlu1 %v2469_v29, %s2575_s9 }
0x1be0   :  { %v2471_v30 = vpop.eup %2470 }
0x1be1   :  { %1638 = vrot.lane.b32.xlu0 %v2471_v30, %s2575_s9 }
0x1be2   :  { %v2473_v18 = vpop.eup %2472 }
0x1be3   :  { %v1632_v31 = vadd.f32 1.0, %v2473_v18 }
0x1be5   :  { %2474 = vrcp.f32 %v1632_v31 }
0x1bef   :  { %v2475_v32 = vpop.eup %2474 }
0x1bf0   :  { %v1636_v40 = vmul.f32 %v2475_v32, %v3235_v54 }
0x1c51   :  { %v1529_v38 = vpop.permute.xlu1 %1528 }
0x1c52   :  { %v1531_v42 = vmul.f32 %v2467_v36, %v1529_v38 }
0x1c53   :  { %v1639_v33 = vpop.permute.xlu0 %1638 }
0x1c54   :  { %v1641_v34 = vmul.f32 %v2475_v32, %v1639_v33 }
0x1c56   :  { %1643 = vrot.lane.b32.xlu0 %v1641_v34, %s2576_s10 }
0x1cc8   :  { %v1644_v41 = vpop.permute.xlu0 %1643 }
0x1cc9   :  { %v1646_v28 = vadd.f32 %v1644_v41, %v1636_v40 }
0x1ccb   :  { %2476 = vtanh.f32 %v1646_v28 }
0x1cd5   :  { %v2477_v23 = vpop.eup %2476 }
0x1cd6   :  { %1649 = vrot.lane.b32.xlu0 %v2477_v23, %s2575_s9 }
0x1cda   :  { %1657 = vrot.lane.b32.xlu0 %v1531_v42, %s2575_s9 }
0x1d48   :  { %v1650_v35 = vpop.permute.xlu0 %1649 }
0x1d49   :  { %v1652_v20 = vmul.f32 %v2475_v32, %v1650_v35 }
0x1d4b   :  { %1654 = vrot.lane.b32.xlu1 %v1652_v20, %s2576_s10 }
0x1d4c   :  { %v1658_v50 = vpop.permute.xlu0 %1657 }
0x1dbd   :  { %v1655_v51 = vpop.permute.xlu1 %1654 }
0x1dbe   :  { %v1660_v49 = vsel %vm250_vm3, %v1655_v51, %v1658_v50  ;;  %1735 = vst.msk [vmem:[#allocation4] sm:$0xff] %vm250_vm3, %v1655_v51 }
0x1dbf   :  { %v1661_v54 = vpack.c.bf16 %v1660_v49, %v1660_v49 }
0x1dc1   :  { %2329 = vmatmul.mubr.msk.bf16.vlgmr.msra.gmra.mrb[44].mxu0 %vm283_vm4, %v1661_v54 }
0x1e94   :  { %v1699_v55 = vpop.f32.mrb[44].mxu0 }
0x1e95   :  { %v1700_v39 = vadd.f32 %v3189_v7, %v1699_v55  ;;  %v2330_v59 = vpop.f32.mrb[45].mxu0 }
0x1e96   :  { %v1702_v10 = vpop.f32.mrb[46].mxu0 }
0x1e97   :  { %2478 = vtanh.f32 %v1700_v39  ;;  %v2331_v44 = vpop.f32.mrb[47].mxu0  ;;  %v1851_v5 = vmul.f32 -1.442695, %v1700_v39 }
0x1e99   :  { %2480 = vpow2.f32 %v1851_v5 }
0x1ea1   :  { %v2479_v60 = vpop.eup %2478 }
0x1ea2   :  { %1714 = vrot.lane.b32.xlu1 %v2479_v60, %s2575_s9 }
0x1ea3   :  { %v2481_v61 = vpop.eup %2480 }
0x1ea4   :  { %v1708_v58 = vadd.f32 1.0, %v2481_v61 }
0x1ea6   :  { %2482 = vrcp.f32 %v1708_v58 }
0x1eb0   :  { %v2483_v0 = vpop.eup %2482 }
0x1eb1   :  { %v1712_v7 = vmul.f32 %v2483_v0, %v1525_v24 }
0x1f14   :  { %v1715_v2 = vpop.permute.xlu1 %1714 }
0x1f15   :  { %v1717_v3 = vmul.f32 %v2483_v0, %v1715_v2 }
0x1f17   :  { %1719 = vrot.lane.b32.xlu0 %v1717_v3, %s2576_s10 }
0x1f1b   :  { %548 = vrot.lane.b32.xlu0 %v2897_v47, %s2576_s10 }
0x1f1f   :  { %942 = vrot.lane.b32.xlu0 %v3027_v52, %s2576_s10 }
0x1f23   :  { %1336 = vrot.lane.b32.xlu0 %v3239_v4, %s2576_s10 }
0x1f89   :  { %v1720_v45 = vpop.permute.xlu0 %1719 }
0x1f8a   :  { %v1722_v62 = vadd.f32 %v1720_v45, %v1712_v7 }
0x1f8c   :  { %2484 = vtanh.f32 %v1722_v62 }
0x1f8d   :  { %v549_v56 = vpop.permute.xlu0 %548 }
0x1f8e   :  { %552 = vst.msk [vmem:[#allocation2 + $0x8] sm:$0xff] %vm250_vm3, %v549_v56 }
0x1f91   :  { %v943_v8 = vpop.permute.xlu0 %942 }
0x1f92   :  { %946 = vst.msk [vmem:[#allocation2 + $0x18] sm:$0xff] %vm250_vm3, %v943_v8 }
0x1f95   :  { %v1337_v57 = vpop.permute.xlu0 %1336 }
0x1f96   :  { %v2485_v63 = vpop.eup %2484  ;;  %1340 = vst.msk [vmem:[#allocation2 + $0x28] sm:$0xff] %vm250_vm3, %v1337_v57 }
0x1f97   :  { %1725 = vrot.lane.b32.xlu1 %v2485_v63, %s2575_s9  ;;  %s2579_s9 = smov [#allocation4]  }
0x1f98   :  { %s1766_s26 = sshll.u32 %s2579_s9, 4  ;;  %s1767_s26 = int_to_ptr.vmem [resolvable:$true] %s1766_s26 }
0x1f99   :  { %s2503_s29 = scalar_lea.vmem %s1767_s26, 256  ;;  %p2508_p1 = scmp.lt.s32.totalorder %s1767_s26, %s1767_s26 }
0x1f9a   :  { %p2504_p0 = scmp.ne.s32.totalorder %s1767_s26, %s2503_s29  ;;  %p2509_p2 = scmp.lt.s32.totalorder %s2503_s29, %s2503_s29 }
0x1f9b   :  { %352 = vrot.lane.b32.xlu1 %v2832_v43, %s2576_s10 }
0x1f9c   :  { %p2510_p3 = por %p2509_p2, %p2508_p1 }
0x1f9e   :  { %p2511_p4 = pnand %p2510_p3, %p2504_p0 }
0x1f9f   :  { %745 = vrot.lane.b32.xlu1 %v2962_v53, %s2576_s10 }
0x1fa3   :  { %1139 = vrot.lane.b32.xlu1 %v3127_v46, %s2576_s10 }
0x1fa7   :  { %1533 = vrot.lane.b32.xlu1 %v1531_v42, %s2576_s10 }
0x1fab   :  { %1744 = vrot.lane.b32.xlu1 %v1722_v62, %s2578_s0 }
0x2009   :  { %v1726_v47 = vpop.permute.xlu1 %1725 }
0x200a   :  { %v1728_v52 = vmul.f32 %v2483_v0, %v1726_v47 }
0x200c   :  { %1730 = vrot.lane.b32.xlu0 %v1728_v52, %s2576_s10  ;;  %s1754_s10 = sshll.u32 %s2580_s3, 4  ;;  %s3319_s10 = int_to_ptr.vmem [resolvable:$true] %s1754_s10 }
0x200d   :  { %v353_v4 = vpop.permute.xlu1 %352 }
0x200e   :  { %355 = vst.msk [vmem:[#allocation2] sm:$0xff] %vm250_vm3, %v353_v4 }
0x2010   :  { %1739 = vrot.lane.b32.xlu0 %v1646_v28, %s2578_s0 }
0x2011   :  { %v746_v6 = vpop.permute.xlu1 %745 }
0x2012   :  { %749 = vst.msk [vmem:[#allocation2 + $0x10] sm:$0xff] %vm250_vm3, %v746_v6 }
0x2015   :  { %v1140_v43 = vpop.permute.xlu1 %1139 }
0x2016   :  { %1143 = vst.msk [vmem:[#allocation2 + $0x20] sm:$0xff] %vm250_vm3, %v1140_v43 }
0x2019   :  { %v1534_v53 = vpop.permute.xlu1 %1533 }
0x201a   :  { %1537 = vst.msk [vmem:[#allocation2 + $0x30] sm:$0xff] %vm250_vm3, %v1534_v53 }
0x201d   :  { %v1745_v46 = vpop.permute.xlu1 %1744 }
0x201e   :  { %1748 = vst.msk [vmem:[#allocation6 + $0x8] sm:$0xff] %vm250_vm3, %v1745_v46 }
0x207e   :  { %v1731_v11 = vpop.permute.xlu0 %1730 }
0x207f   :  { %1734 = vst.msk [vmem:[#allocation2 + $0x38] sm:$0xff] %vm250_vm3, %v1731_v11  ;;  %1737 = vst.msk [vmem:[#allocation4 + $0x8] sm:$0xff] %vm250_vm3, %v1731_v11 }
0x2080   :  { %2514 = shalt.err (!%p2511_p4)
}
0x2081   :  { %s2515_s12 = scalar_lea.hbm %s3388_s7, 256 }
0x2082   :  { %p2516_p5 = scmp.ne.s32.totalorder %s3388_s7, %s2515_s12  ;;  %p2519_p6 = scmp.lt.u32.totalorder %s2515_s12, %s3388_s7 }
0x2084   :  { %p2521_p7 = pnand %p2519_p6, %p2516_p5 }
0x2086   :  { %2524 = shalt.err (!%p2521_p7)
}
0x2087   :  { %s2582_s17 = smov 128   ;;  %s2583_s1 = smov 8  }
0x2088   :  { %1772 = dma.vmem_to_hbm [thread:$0]  %s1767_s26, 256, %s3388_s7, [#allocation5], %s2582_s17, %s2582_s17, %s2583_s1  }
0x2089   :  { %s2525_s5 = scalar_lea.vmem %s3319_s10, 1024  ;;  %p2530_p9 = scmp.lt.s32.totalorder %s3319_s10, %s3319_s10 }
0x208a   :  { %p2526_p8 = scmp.ne.s32.totalorder %s3319_s10, %s2525_s5  ;;  %p2531_p10 = scmp.lt.s32.totalorder %s2525_s5, %s2525_s5 }
0x208c   :  { %p2532_p11 = por %p2531_p10, %p2530_p9 }
0x208e   :  { %p2533_p12 = pnand %p2532_p11, %p2526_p8 }
0x2090   :  { %2536 = shalt.err (!%p2533_p12)
}
0x2091   :  { %s2537_s22 = scalar_lea.hbm %s3387_s6, 1024 }
0x2092   :  { %p2538_p13 = scmp.ne.s32.totalorder %s3387_s6, %s2537_s22  ;;  %p2541_p0 = scmp.lt.u32.totalorder %s2537_s22, %s3387_s6 }
0x2094   :  { %p2543_p1 = pnand %p2541_p0, %p2538_p13 }
0x2096   :  { %2546 = shalt.err (!%p2543_p1)
}
0x2097   :  { %1760 = dma.vmem_to_hbm [thread:$0]  %s3319_s10, 1024, %s3387_s6, [#allocation3], %s2582_s17, %s2582_s17, %s2583_s1   ;;  %v1740_v12 = vpop.permute.xlu0 %1739 }
0x2098   :  { %1742 = vst.msk [vmem:[#allocation6] sm:$0xff] %vm250_vm3, %v1740_v12  ;;  %s2547_s0 = scalar_lea.vmem %s3323_s28, 256  ;;  %p2552_p3 = scmp.lt.s32.totalorder %s3323_s28, %s3323_s28 }
0x2099   :  { %p2548_p2 = scmp.ne.s32.totalorder %s3323_s28, %s2547_s0  ;;  %p2553_p4 = scmp.lt.s32.totalorder %s2547_s0, %s2547_s0 }
0x209b   :  { %p2554_p5 = por %p2553_p4, %p2552_p3 }
0x209d   :  { %p2555_p6 = pnand %p2554_p5, %p2548_p2 }
0x209f   :  { %2558 = shalt.err (!%p2555_p6)
}
0x20a0   :  { %s2559_s3 = scalar_lea.hbm %s3389_s8, 256 }
0x20a1   :  { %p2560_p7 = scmp.ne.s32.totalorder %s3389_s8, %s2559_s3  ;;  %p2563_p8 = scmp.lt.u32.totalorder %s2559_s3, %s3389_s8 }
0x20a3   :  { %p2565_p9 = pnand %p2563_p8, %p2560_p7 }
0x20a5   :  { %2568 = shalt.err (!%p2565_p9)
}
0x20a6   :  { %1784 = dma.vmem_to_hbm [thread:$0]  %s3323_s28, 256, %s3389_s8, [#allocation5], %s2582_s17, %s2582_s17, %s2583_s1  }
0x20a7   :  { %2569 = dma.done.wait [#allocation3], 1024  }
0x20a8   :  { %2570 = vsyncadd [#allocation3], 4294966272 }
0x20a9   :  { %2571 = dma.done.wait [#allocation5], 512  }
0x20aa   :  { %2572 = vsyncadd [#allocation5], 4294966784 }
0x20ab   :  { %1794 = vsyncpa [#allocation3], 1 }
0x20ac   :  { %1795 = vsyncpa [#allocation5], 1 }

</bundles_post_ra>
